<compile_context>
chip_gen: v7x
topology: tpu7x:2x2x1
jax: 0.10.0
libtpu: 0.0.40
codegen_flags: <defaults>
</compile_context>

<pallas_src>
import functools

import jax
import jax.numpy as jnp
from jax.experimental import pallas as pl
from jax.experimental.pallas import tpu as pltpu

BN_EPS = 1e-5
LRELU_SLOPE = 0.2
MAX_TM = 1024          # rows per tile upper bound (multiple of 8)


def _round_up(x, m):
    return (x + m - 1) // m * m


def _vmem_limit(tm, k, np_, out_bytes):
    """Derive a VMEM budget from the actual (double-buffered) tile sizes."""
    buf = (2 * tm * k * 2          # patches tile, bf16, double-buffered
           + 2 * k * np_ * 2       # weights, bf16
           + 2 * 2 * 8 * np_ * 4   # gamma / beta (sublane-padded)
           + 2 * tm * np_ * out_bytes   # output tile, double-buffered
           + 4 * 8 * np_ * 4)      # scratch: sum, sumsq, scale, shift
    return int(min(max(2 * buf, 4 * 2**20), 48 * 2**20))


# ---------------------------------------------------------------------------
# Fused conv + BatchNorm(batch stats) + LeakyReLU kernel
#   grid = (2, num_tiles):  axis 0 = pass (0: stats, 1: normalize+store),
#                           axis 1 = M tile (rows of the im2col matrix).
# ---------------------------------------------------------------------------
def _conv_bn_lrelu_kernel(p_ref, w_ref, g_ref, b_ref, o_ref,
                          sum_acc, sq_acc, scale_s, shift_s, *, m_count):
    phase = pl.program_id(0)
    i = pl.program_id(1)
    inv_m = 1.0 / m_count

    # bf16 MXU operands, f32 accumulation.  Recomputed in pass 1 on purpose:
    # cheaper than an f32 y round-trip through HBM on these HBM-bound layers.
    y = jnp.dot(p_ref[...], w_ref[...], preferred_element_type=jnp.float32)

    @pl.when(jnp.logical_and(phase == 0, i == 0))
    def _():
        sum_acc[...] = jnp.zeros_like(sum_acc)
        sq_acc[...] = jnp.zeros_like(sq_acc)

    @pl.when(phase == 0)
    def _():
        sum_acc[...] += jnp.sum(y, axis=0, keepdims=True)
        sq_acc[...] += jnp.sum(y * y, axis=0, keepdims=True)

    @pl.when(jnp.logical_and(phase == 1, i == 0))
    def _():
        mean = sum_acc[...] * inv_m
        var = jnp.maximum(sq_acc[...] * inv_m - mean * mean, 0.0)  # biased var
        sc = g_ref[...] * jax.lax.rsqrt(var + BN_EPS)
        scale_s[...] = sc
        shift_s[...] = b_ref[...] - mean * sc

    @pl.when(phase == 1)
    def _():
        z = y * scale_s[...] + shift_s[...]
        o_ref[...] = jnp.where(z >= 0, z, LRELU_SLOPE * z).astype(o_ref.dtype)


# ---------------------------------------------------------------------------
# JAX glue: NHWC im2col (layout plumbing only, no FLOPs)
# ---------------------------------------------------------------------------
def im2col_nhwc(x, cin, kh, kw, stride, pad):
    """x: (B, H, W, C>=cin) -> patches (B*Ho*Wo, kh*kw*cin); row order
    (b, oh, ow), column order (kh, kw, cin).  Channel slice fuses into the
    slab gather (avoids a narrow-lane copy between layers)."""
    B, H, W, _ = x.shape
    xp = jnp.pad(x, ((0, 0), (pad, pad), (pad, pad), (0, 0)))
    Ho = (H + 2 * pad - kh) // stride + 1
    Wo = (W + 2 * pad - kw) // stride + 1
    slabs = []
    for i in range(kh):
        for j in range(kw):
            slabs.append(xp[:, i:i + stride * Ho:stride,
                            j:j + stride * Wo:stride, :cin])  # (B, Ho, Wo, cin)
    p = jnp.stack(slabs, axis=3)                               # (B, Ho, Wo, kh*kw, cin)
    return p.reshape(B * Ho * Wo, kh * kw * cin), Ho, Wo


def w_to_2d_nhwc(w):
    """(C_out, C_in, kh, kw) -> (kh*kw*C_in, C_out), matching im2col_nhwc cols."""
    cout = w.shape[0]
    return w.transpose(2, 3, 1, 0).reshape(-1, cout)


# ---------------------------------------------------------------------------
# One fused conv + BN(batch stats) + LeakyReLU layer
# ---------------------------------------------------------------------------
def conv_bn_lrelu_layer(x_nhwc, w, gamma, beta, *, stride=2, pad=1,
                        out_dtype=jnp.bfloat16):
    B = x_nhwc.shape[0]
    cout, cin, kh, kw = w.shape

    # bf16 before im2col -> the patch matrix is materialized at half the bytes.
    patches, Ho, Wo = im2col_nhwc(x_nhwc.astype(jnp.bfloat16), cin, kh, kw,
                                  stride, pad)
    M, K = patches.shape
    Np = _round_up(cout, 128)                      # lane-dense output width

    # Tile rows to minimize padding (per-step overhead ~0.35us, VMEM tiny).
    num_tiles = pl.cdiv(M, MAX_TM)
    TM = _round_up(pl.cdiv(M, num_tiles), 8)
    Mp = num_tiles * TM

    patches_p = jnp.pad(patches, ((0, Mp - M), (0, 0)))           # bf16
    w_p = jnp.pad(w_to_2d_nhwc(w), ((0, 0), (0, Np - cout))).astype(jnp.bfloat16)
    gamma_p = jnp.pad(gamma.astype(jnp.float32), (0, Np - cout)).reshape(1, Np)
    beta_p = jnp.pad(beta.astype(jnp.float32), (0, Np - cout)).reshape(1, Np)

    out_bytes = jnp.dtype(out_dtype).itemsize
    kernel = functools.partial(_conv_bn_lrelu_kernel, m_count=float(M))

    out = pl.pallas_call(
        kernel,
        out_shape=jax.ShapeDtypeStruct((Mp, Np), out_dtype),
        grid=(2, num_tiles),
        in_specs=[pl.BlockSpec((TM, K), lambda p, i: (i, 0)),
                  pl.BlockSpec((K, Np), lambda p, i: (0, 0)),
                  pl.BlockSpec((1, Np), lambda p, i: (0, 0)),
                  pl.BlockSpec((1, Np), lambda p, i: (0, 0))],
        # Out-block index stays 0 through pass 0 (no writeback of unwritten
        # tiles); pass 1 walks the tiles and writes each exactly once.
        out_specs=pl.BlockSpec((TM, Np), lambda p, i: (i * p, 0)),
        scratch_shapes=[pltpu.VMEM((1, Np), jnp.float32),   # sum
                        pltpu.VMEM((1, Np), jnp.float32),   # sum of squares
                        pltpu.VMEM((1, Np), jnp.float32),   # BN scale
                        pltpu.VMEM((1, Np), jnp.float32)],  # BN shift
        compiler_params=pltpu.CompilerParams(
            dimension_semantics=("arbitrary", "arbitrary"),
            vmem_limit_bytes=_vmem_limit(TM, K, Np, out_bytes)),
        cost_estimate=pl.CostEstimate(
            flops=2 * 2 * Mp * K * Np,
            transcendentals=0,
            bytes_accessed=2 * Mp * K * 2 + K * Np * 2 + Mp * Np * out_bytes),
    )(patches_p, w_p, gamma_p, beta_p)

    # Keep the lane-dense (padded-channel) activation; the next layer's im2col
    # slices the real channels.  Padded channels are exact zeros.
    return out[:M].reshape(B, Ho, Wo, Np)


# ---------------------------------------------------------------------------
# Discriminator forward
# ---------------------------------------------------------------------------
def discriminator_forward(x, params):
    B = x.shape[0]
    h = x.transpose(0, 2, 3, 1).astype(jnp.bfloat16)     # NCHW -> NHWC, bf16, once

    # Conv biases b1/b2/b3 cancel exactly against BN mean subtraction -> dropped.
    h = conv_bn_lrelu_layer(h, params["w1"], params["g1"], params["beta1"])
    h = conv_bn_lrelu_layer(h, params["w2"], params["g2"], params["beta2"])
    h = conv_bn_lrelu_layer(h, params["w3"], params["g3"], params["beta3"],
                            out_dtype=jnp.float32)

    cout3 = params["w3"].shape[0]
    h = h[..., :cout3]                                    # drop lane padding once
    # PyTorch h.view(B, -1) flattens NCHW order -> single transpose at boundary.
    h_flat = h.transpose(0, 3, 1, 2).reshape(B, -1)

    # Layer 4: Conv(4C -> 1, dside//8, 1, 0) == dot(h_flat, w4_flat) + b4.
    # Plain XLA: at B=2, K=64 a pallas_call would be pure launch overhead.
    w4_flat = params["w4"].reshape(-1)                    # (C_in, kh, kw) order
    out = h_flat @ w4_flat + params["b4"]
    return out.reshape(-1, 1), h_flat


# ---------------------------------------------------------------------------
# Deterministic parameter init (shapes from Discriminator.__init__)
# ---------------------------------------------------------------------------
def make_params(key, dside, nc):
    ks = jax.random.split(key, 8)

    def rnd(k, shape):
        return jax.random.normal(k, shape, dtype=jnp.float32) * 0.05

    return {
        "w1": rnd(ks[0], (nc, 1, 4, 4)),
        "b1": rnd(ks[1], (nc,)),                # unused: cancels in BN
        "g1": jnp.ones((nc,), jnp.float32),
        "beta1": jnp.zeros((nc,), jnp.float32),

        "w2": rnd(ks[2], (2 * nc, nc, 4, 4)),
        "b2": rnd(ks[3], (2 * nc,)),            # unused: cancels in BN
        "g2": jnp.ones((2 * nc,), jnp.float32),
        "beta2": jnp.zeros((2 * nc,), jnp.float32),

        "w3": rnd(ks[4], (4 * nc, 2 * nc, 4, 4)),
        "b3": rnd(ks[5], (4 * nc,)),            # unused: cancels in BN
        "g3": jnp.ones((4 * nc,), jnp.float32),
        "beta3": jnp.zeros((4 * nc,), jnp.float32),

        "w4": rnd(ks[6], (1, 4 * nc, dside // 8, dside // 8)),
        "b4": rnd(ks[7], (1,)),
    }


if __name__ == "__main__":
    dside = 16          # spatial size (divisible by 8)
    num_channels = 4
    batch = 2

    key = jax.random.PRNGKey(0)
    kx, kp = jax.random.split(key)
    x = jax.random.normal(kx, (batch, 1, dside, dside), dtype=jnp.float32)
    params = make_params(kp, dside, num_channels)

    fwd = jax.jit(discriminator_forward)
    out, h_flat = fwd(x, params)
    jax.block_until_ready((out, h_flat))

    assert out.shape == (batch, 1)
    assert h_flat.shape == (batch, 4 * num_channels * (dside // 8) ** 2)
    print("KERNEL_OK")
</pallas_src>

<mosaic_0001>
module attributes {stable_mosaic.version = 11 : i64} {
  func.func @_conv_bn_lrelu_kernel(%arg0: i32, %arg1: i32, %arg2: memref<128x16xbf16, #tpu.memory_space<vmem>>, %arg3: memref<16x128xbf16, #tpu.memory_space<vmem>>, %arg4: memref<1x128xf32, #tpu.memory_space<vmem>>, %arg5: memref<1x128xf32, #tpu.memory_space<vmem>>, %arg6: memref<128x128xbf16, #tpu.memory_space<vmem>>, %arg7: memref<1x128xf32, #tpu.memory_space<vmem>>, %arg8: memref<1x128xf32, #tpu.memory_space<vmem>>, %arg9: memref<1x128xf32, #tpu.memory_space<vmem>>, %arg10: memref<1x128xf32, #tpu.memory_space<vmem>>) attributes {dimension_semantics = [#tpu.dimension_semantics<arbitrary>, #tpu.dimension_semantics<arbitrary>], iteration_bounds = array<i64: 2, 1>, scalar_prefetch = 0 : i64, scratch_operands = 4 : i64, tpu.core_type = #tpu.core_type<tc>, window_params = [{transform_indices = @transform_0, window_bounds = array<i64: 128, 16>}, {pipeline_mode = #tpu.pipeline_mode<synchronous>, transform_indices = @transform_1, window_bounds = array<i64: 16, 128>}, {pipeline_mode = #tpu.pipeline_mode<synchronous>, transform_indices = @transform_2, window_bounds = array<i64: 1, 128>}, {pipeline_mode = #tpu.pipeline_mode<synchronous>, transform_indices = @transform_3, window_bounds = array<i64: 1, 128>}, {transform_indices = @transform_4, window_bounds = array<i64: 128, 128>}]} {
    %c0 = arith.constant 0 : index
    %c0_0 = arith.constant 0 : index
    %0 = vector.load %arg2[%c0, %c0_0] : memref<128x16xbf16, #tpu.memory_space<vmem>>, vector<128x16xbf16>
    %c0_1 = arith.constant 0 : index
    %c0_2 = arith.constant 0 : index
    %1 = vector.load %arg3[%c0_1, %c0_2] : memref<16x128xbf16, #tpu.memory_space<vmem>>, vector<16x128xbf16>
    %cst = arith.constant dense<0.000000e+00> : vector<128x128xf32>
    %2 = tpu.matmul %0, %1, %cst {dimension_numbers = #tpu.dot_dimension_numbers<[1], [0], [0], [1], [0, 0, 1, 1], [], []>} : vector<128x16xbf16>, vector<16x128xbf16>, vector<128x128xf32> -> vector<128x128xf32>
    %c0_i32 = arith.constant 0 : i32
    %3 = arith.cmpi eq, %arg0, %c0_i32 : i32
    %c0_i32_3 = arith.constant 0 : i32
    %4 = arith.cmpi eq, %arg1, %c0_i32_3 : i32
    %5 = arith.andi %3, %4 : i1
    %6 = arith.extui %5 : i1 to i32
    %c0_i32_4 = arith.constant 0 : i32
    %7 = arith.cmpi ne, %6, %c0_i32_4 : i32
    scf.if %7 {
      %cst_11 = arith.constant 0.000000e+00 : f32
      %19 = vector.broadcast %cst_11 : f32 to vector<1x128xf32>
      %c0_12 = arith.constant 0 : index
      %c0_13 = arith.constant 0 : index
      %20 = vector.load %arg7[%c0_12, %c0_13] : memref<1x128xf32, #tpu.memory_space<vmem>>, vector<1x128xf32>
      tpu.vector_store %arg7[%c0_12, %c0_13], %19 {strides = array<i32>} : memref<1x128xf32, #tpu.memory_space<vmem>>, vector<1x128xf32>,
      %cst_14 = arith.constant 0.000000e+00 : f32
      %21 = vector.broadcast %cst_14 : f32 to vector<1x128xf32>
      %c0_15 = arith.constant 0 : index
      %c0_16 = arith.constant 0 : index
      %22 = vector.load %arg8[%c0_15, %c0_16] : memref<1x128xf32, #tpu.memory_space<vmem>>, vector<1x128xf32>
      tpu.vector_store %arg8[%c0_15, %c0_16], %21 {strides = array<i32>} : memref<1x128xf32, #tpu.memory_space<vmem>>, vector<1x128xf32>,
    } else {
    }
    %c0_i32_5 = arith.constant 0 : i32
    %8 = arith.cmpi eq, %arg0, %c0_i32_5 : i32
    %9 = arith.extui %8 : i1 to i32
    %c0_i32_6 = arith.constant 0 : i32
    %10 = arith.cmpi ne, %9, %c0_i32_6 : i32
    scf.if %10 {
      %c0_11 = arith.constant 0 : index
      %c0_12 = arith.constant 0 : index
      %19 = vector.load %arg7[%c0_11, %c0_12] : memref<1x128xf32, #tpu.memory_space<vmem>>, vector<1x128xf32>
      %cst_13 = arith.constant dense<0.000000e+00> : vector<128xf32>
      %20 = vector.multi_reduction <add>, %2, %cst_13 [0] : vector<128x128xf32> to vector<128xf32>
      %21 = vector.shape_cast %20 : vector<128xf32> to vector<1x128xf32>
      %22 = arith.addf %19, %21 : vector<1x128xf32>
      %c0_14 = arith.constant 0 : index
      %c0_15 = arith.constant 0 : index
      %23 = vector.load %arg7[%c0_14, %c0_15] : memref<1x128xf32, #tpu.memory_space<vmem>>, vector<1x128xf32>
      tpu.vector_store %arg7[%c0_14, %c0_15], %22 {strides = array<i32>} : memref<1x128xf32, #tpu.memory_space<vmem>>, vector<1x128xf32>,
      %c0_16 = arith.constant 0 : index
      %c0_17 = arith.constant 0 : index
      %24 = vector.load %arg8[%c0_16, %c0_17] : memref<1x128xf32, #tpu.memory_space<vmem>>, vector<1x128xf32>
      %25 = arith.mulf %2, %2 : vector<128x128xf32>
      %cst_18 = arith.constant dense<0.000000e+00> : vector<128xf32>
      %26 = vector.multi_reduction <add>, %25, %cst_18 [0] : vector<128x128xf32> to vector<128xf32>
      %27 = vector.shape_cast %26 : vector<128xf32> to vector<1x128xf32>
      %28 = arith.addf %24, %27 : vector<1x128xf32>
      %c0_19 = arith.constant 0 : index
      %c0_20 = arith.constant 0 : index
      %29 = vector.load %arg8[%c0_19, %c0_20] : memref<1x128xf32, #tpu.memory_space<vmem>>, vector<1x128xf32>
      tpu.vector_store %arg8[%c0_19, %c0_20], %28 {strides = array<i32>} : memref<1x128xf32, #tpu.memory_space<vmem>>, vector<1x128xf32>,
    } else {
    }
    %c1_i32 = arith.constant 1 : i32
    %11 = arith.cmpi eq, %arg0, %c1_i32 : i32
    %c0_i32_7 = arith.constant 0 : i32
    %12 = arith.cmpi eq, %arg1, %c0_i32_7 : i32
    %13 = arith.andi %11, %12 : i1
    %14 = arith.extui %13 : i1 to i32
    %c0_i32_8 = arith.constant 0 : i32
    %15 = arith.cmpi ne, %14, %c0_i32_8 : i32
    scf.if %15 {
      %c0_11 = arith.constant 0 : index
      %c0_12 = arith.constant 0 : index
      %19 = vector.load %arg7[%c0_11, %c0_12] : memref<1x128xf32, #tpu.memory_space<vmem>>, vector<1x128xf32>
      %cst_13 = arith.constant 7.812500e-03 : f32
      %20 = vector.broadcast %cst_13 : f32 to vector<1x128xf32>
      %21 = arith.mulf %19, %20 : vector<1x128xf32>
      %c0_14 = arith.constant 0 : index
      %c0_15 = arith.constant 0 : index
      %22 = vector.load %arg8[%c0_14, %c0_15] : memref<1x128xf32, #tpu.memory_space<vmem>>, vector<1x128xf32>
      %cst_16 = arith.constant 7.812500e-03 : f32
      %23 = vector.broadcast %cst_16 : f32 to vector<1x128xf32>
      %24 = arith.mulf %22, %23 : vector<1x128xf32>
      %25 = arith.mulf %21, %21 : vector<1x128xf32>
      %26 = arith.subf %24, %25 : vector<1x128xf32>
      %cst_17 = arith.constant 0.000000e+00 : f32
      %27 = vector.broadcast %cst_17 : f32 to vector<1x128xf32>
      %28 = arith.maximumf %26, %27 : vector<1x128xf32>
      %c0_18 = arith.constant 0 : index
      %c0_19 = arith.constant 0 : index
      %29 = vector.load %arg4[%c0_18, %c0_19] : memref<1x128xf32, #tpu.memory_space<vmem>>, vector<1x128xf32>
      %cst_20 = arith.constant 9.99999974E-6 : f32
      %30 = vector.broadcast %cst_20 : f32 to vector<1x128xf32>
      %31 = arith.addf %28, %30 : vector<1x128xf32>
      %32 = math.rsqrt %31 : vector<1x128xf32>
      %33 = arith.mulf %29, %32 : vector<1x128xf32>
      %c0_21 = arith.constant 0 : index
      %c0_22 = arith.constant 0 : index
      %34 = vector.load %arg9[%c0_21, %c0_22] : memref<1x128xf32, #tpu.memory_space<vmem>>, vector<1x128xf32>
      tpu.vector_store %arg9[%c0_21, %c0_22], %33 {strides = array<i32>} : memref<1x128xf32, #tpu.memory_space<vmem>>, vector<1x128xf32>,
      %c0_23 = arith.constant 0 : index
      %c0_24 = arith.constant 0 : index
      %35 = vector.load %arg5[%c0_23, %c0_24] : memref<1x128xf32, #tpu.memory_space<vmem>>, vector<1x128xf32>
      %36 = arith.mulf %21, %33 : vector<1x128xf32>
      %37 = arith.subf %35, %36 : vector<1x128xf32>
      %c0_25 = arith.constant 0 : index
      %c0_26 = arith.constant 0 : index
      %38 = vector.load %arg10[%c0_25, %c0_26] : memref<1x128xf32, #tpu.memory_space<vmem>>, vector<1x128xf32>
      tpu.vector_store %arg10[%c0_25, %c0_26], %37 {strides = array<i32>} : memref<1x128xf32, #tpu.memory_space<vmem>>, vector<1x128xf32>,
    } else {
    }
    %c1_i32_9 = arith.constant 1 : i32
    %16 = arith.cmpi eq, %arg0, %c1_i32_9 : i32
    %17 = arith.extui %16 : i1 to i32
    %c0_i32_10 = arith.constant 0 : i32
    %18 = arith.cmpi ne, %17, %c0_i32_10 : i32
    scf.if %18 {
      %c0_11 = arith.constant 0 : index
      %c0_12 = arith.constant 0 : index
      %19 = vector.load %arg9[%c0_11, %c0_12] : memref<1x128xf32, #tpu.memory_space<vmem>>, vector<1x128xf32>
      %20 = vector.broadcast %19 : vector<1x128xf32> to vector<128x128xf32>
      %21 = arith.mulf %2, %20 : vector<128x128xf32>
      %c0_13 = arith.constant 0 : index
      %c0_14 = arith.constant 0 : index
      %22 = vector.load %arg10[%c0_13, %c0_14] : memref<1x128xf32, #tpu.memory_space<vmem>>, vector<1x128xf32>
      %23 = vector.broadcast %22 : vector<1x128xf32> to vector<128x128xf32>
      %24 = arith.addf %21, %23 : vector<128x128xf32>
      %cst_15 = arith.constant 0.000000e+00 : f32
      %25 = vector.broadcast %cst_15 : f32 to vector<128x128xf32>
      %26 = arith.cmpf oge, %24, %25 : vector<128x128xf32>
      %cst_16 = arith.constant 2.000000e-01 : f32
      %27 = vector.broadcast %cst_16 : f32 to vector<128x128xf32>
      %28 = arith.mulf %27, %24 : vector<128x128xf32>
      %29 = arith.select %26, %24, %28 : vector<128x128xi1>, vector<128x128xf32>
      %30 = arith.truncf %29 : vector<128x128xf32> to vector<128x128xbf16>
      %c0_17 = arith.constant 0 : index
      %c0_18 = arith.constant 0 : index
      %31 = vector.load %arg6[%c0_17, %c0_18] : memref<128x128xbf16, #tpu.memory_space<vmem>>, vector<128x128xbf16>
      tpu.vector_store %arg6[%c0_17, %c0_18], %30 {strides = array<i32>} : memref<128x128xbf16, #tpu.memory_space<vmem>>, vector<128x128xbf16>,
    } else {
    }
    return
  }
  func.func @transform_0(%arg0: i32, %arg1: i32) -> (i32, i32) {
    %c0_i32 = arith.constant 0 : i32
    %c0_i32_0 = arith.constant 0 : i32
    return %arg1, %c0_i32 : i32, i32
  }
  func.func @transform_1(%arg0: i32, %arg1: i32) -> (i32, i32) {
    %c0_i32 = arith.constant 0 : i32
    %c0_i32_0 = arith.constant 0 : i32
    %c0_i32_1 = arith.constant 0 : i32
    return %c0_i32, %c0_i32_0 : i32, i32
  }
  func.func @transform_2(%arg0: i32, %arg1: i32) -> (i32, i32) {
    %c0_i32 = arith.constant 0 : i32
    %c0_i32_0 = arith.constant 0 : i32
    %c0_i32_1 = arith.constant 0 : i32
    return %c0_i32, %c0_i32_0 : i32, i32
  }
  func.func @transform_3(%arg0: i32, %arg1: i32) -> (i32, i32) {
    %c0_i32 = arith.constant 0 : i32
    %c0_i32_0 = arith.constant 0 : i32
    %c0_i32_1 = arith.constant 0 : i32
    return %c0_i32, %c0_i32_0 : i32, i32
  }
  func.func @transform_4(%arg0: i32, %arg1: i32) -> (i32, i32) {
    %0 = arith.muli %arg1, %arg0 : i32
    %c0_i32 = arith.constant 0 : i32
    %c0_i32_0 = arith.constant 0 : i32
    return %0, %c0_i32 : i32, i32
  }
}

module attributes {stable_mosaic.version = 11 : i64} {
  func.func @_conv_bn_lrelu_kernel(%arg0: i32, %arg1: i32, %arg2: memref<32x64xbf16, #tpu.memory_space<vmem>>, %arg3: memref<64x128xbf16, #tpu.memory_space<vmem>>, %arg4: memref<1x128xf32, #tpu.memory_space<vmem>>, %arg5: memref<1x128xf32, #tpu.memory_space<vmem>>, %arg6: memref<32x128xbf16, #tpu.memory_space<vmem>>, %arg7: memref<1x128xf32, #tpu.memory_space<vmem>>, %arg8: memref<1x128xf32, #tpu.memory_space<vmem>>, %arg9: memref<1x128xf32, #tpu.memory_space<vmem>>, %arg10: memref<1x128xf32, #tpu.memory_space<vmem>>) attributes {dimension_semantics = [#tpu.dimension_semantics<arbitrary>, #tpu.dimension_semantics<arbitrary>], iteration_bounds = array<i64: 2, 1>, scalar_prefetch = 0 : i64, scratch_operands = 4 : i64, tpu.core_type = #tpu.core_type<tc>, window_params = [{transform_indices = @transform_0, window_bounds = array<i64: 32, 64>}, {pipeline_mode = #tpu.pipeline_mode<synchronous>, transform_indices = @transform_1, window_bounds = array<i64: 64, 128>}, {pipeline_mode = #tpu.pipeline_mode<synchronous>, transform_indices = @transform_2, window_bounds = array<i64: 1, 128>}, {pipeline_mode = #tpu.pipeline_mode<synchronous>, transform_indices = @transform_3, window_bounds = array<i64: 1, 128>}, {transform_indices = @transform_4, window_bounds = array<i64: 32, 128>}]} {
    %c0 = arith.constant 0 : index
    %c0_0 = arith.constant 0 : index
    %0 = vector.load %arg2[%c0, %c0_0] : memref<32x64xbf16, #tpu.memory_space<vmem>>, vector<32x64xbf16>
    %c0_1 = arith.constant 0 : index
    %c0_2 = arith.constant 0 : index
    %1 = vector.load %arg3[%c0_1, %c0_2] : memref<64x128xbf16, #tpu.memory_space<vmem>>, vector<64x128xbf16>
    %cst = arith.constant dense<0.000000e+00> : vector<32x128xf32>
    %2 = tpu.matmul %0, %1, %cst {dimension_numbers = #tpu.dot_dimension_numbers<[1], [0], [0], [1], [0, 0, 1, 1], [], []>} : vector<32x64xbf16>, vector<64x128xbf16>, vector<32x128xf32> -> vector<32x128xf32>
    %c0_i32 = arith.constant 0 : i32
    %3 = arith.cmpi eq, %arg0, %c0_i32 : i32
    %c0_i32_3 = arith.constant 0 : i32
    %4 = arith.cmpi eq, %arg1, %c0_i32_3 : i32
    %5 = arith.andi %3, %4 : i1
    %6 = arith.extui %5 : i1 to i32
    %c0_i32_4 = arith.constant 0 : i32
    %7 = arith.cmpi ne, %6, %c0_i32_4 : i32
    scf.if %7 {
      %cst_11 = arith.constant 0.000000e+00 : f32
      %19 = vector.broadcast %cst_11 : f32 to vector<1x128xf32>
      %c0_12 = arith.constant 0 : index
      %c0_13 = arith.constant 0 : index
      %20 = vector.load %arg7[%c0_12, %c0_13] : memref<1x128xf32, #tpu.memory_space<vmem>>, vector<1x128xf32>
      tpu.vector_store %arg7[%c0_12, %c0_13], %19 {strides = array<i32>} : memref<1x128xf32, #tpu.memory_space<vmem>>, vector<1x128xf32>,
      %cst_14 = arith.constant 0.000000e+00 : f32
      %21 = vector.broadcast %cst_14 : f32 to vector<1x128xf32>
      %c0_15 = arith.constant 0 : index
      %c0_16 = arith.constant 0 : index
      %22 = vector.load %arg8[%c0_15, %c0_16] : memref<1x128xf32, #tpu.memory_space<vmem>>, vector<1x128xf32>
      tpu.vector_store %arg8[%c0_15, %c0_16], %21 {strides = array<i32>} : memref<1x128xf32, #tpu.memory_space<vmem>>, vector<1x128xf32>,
    } else {
    }
    %c0_i32_5 = arith.constant 0 : i32
    %8 = arith.cmpi eq, %arg0, %c0_i32_5 : i32
    %9 = arith.extui %8 : i1 to i32
    %c0_i32_6 = arith.constant 0 : i32
    %10 = arith.cmpi ne, %9, %c0_i32_6 : i32
    scf.if %10 {
      %c0_11 = arith.constant 0 : index
      %c0_12 = arith.constant 0 : index
      %19 = vector.load %arg7[%c0_11, %c0_12] : memref<1x128xf32, #tpu.memory_space<vmem>>, vector<1x128xf32>
      %cst_13 = arith.constant dense<0.000000e+00> : vector<128xf32>
      %20 = vector.multi_reduction <add>, %2, %cst_13 [0] : vector<32x128xf32> to vector<128xf32>
      %21 = vector.shape_cast %20 : vector<128xf32> to vector<1x128xf32>
      %22 = arith.addf %19, %21 : vector<1x128xf32>
      %c0_14 = arith.constant 0 : index
      %c0_15 = arith.constant 0 : index
      %23 = vector.load %arg7[%c0_14, %c0_15] : memref<1x128xf32, #tpu.memory_space<vmem>>, vector<1x128xf32>
      tpu.vector_store %arg7[%c0_14, %c0_15], %22 {strides = array<i32>} : memref<1x128xf32, #tpu.memory_space<vmem>>, vector<1x128xf32>,
      %c0_16 = arith.constant 0 : index
      %c0_17 = arith.constant 0 : index
      %24 = vector.load %arg8[%c0_16, %c0_17] : memref<1x128xf32, #tpu.memory_space<vmem>>, vector<1x128xf32>
      %25 = arith.mulf %2, %2 : vector<32x128xf32>
      %cst_18 = arith.constant dense<0.000000e+00> : vector<128xf32>
      %26 = vector.multi_reduction <add>, %25, %cst_18 [0] : vector<32x128xf32> to vector<128xf32>
      %27 = vector.shape_cast %26 : vector<128xf32> to vector<1x128xf32>
      %28 = arith.addf %24, %27 : vector<1x128xf32>
      %c0_19 = arith.constant 0 : index
      %c0_20 = arith.constant 0 : index
      %29 = vector.load %arg8[%c0_19, %c0_20] : memref<1x128xf32, #tpu.memory_space<vmem>>, vector<1x128xf32>
      tpu.vector_store %arg8[%c0_19, %c0_20], %28 {strides = array<i32>} : memref<1x128xf32, #tpu.memory_space<vmem>>, vector<1x128xf32>,
    } else {
    }
    %c1_i32 = arith.constant 1 : i32
    %11 = arith.cmpi eq, %arg0, %c1_i32 : i32
    %c0_i32_7 = arith.constant 0 : i32
    %12 = arith.cmpi eq, %arg1, %c0_i32_7 : i32
    %13 = arith.andi %11, %12 : i1
    %14 = arith.extui %13 : i1 to i32
    %c0_i32_8 = arith.constant 0 : i32
    %15 = arith.cmpi ne, %14, %c0_i32_8 : i32
    scf.if %15 {
      %c0_11 = arith.constant 0 : index
      %c0_12 = arith.constant 0 : index
      %19 = vector.load %arg7[%c0_11, %c0_12] : memref<1x128xf32, #tpu.memory_space<vmem>>, vector<1x128xf32>
      %cst_13 = arith.constant 3.125000e-02 : f32
      %20 = vector.broadcast %cst_13 : f32 to vector<1x128xf32>
      %21 = arith.mulf %19, %20 : vector<1x128xf32>
      %c0_14 = arith.constant 0 : index
      %c0_15 = arith.constant 0 : index
      %22 = vector.load %arg8[%c0_14, %c0_15] : memref<1x128xf32, #tpu.memory_space<vmem>>, vector<1x128xf32>
      %cst_16 = arith.constant 3.125000e-02 : f32
      %23 = vector.broadcast %cst_16 : f32 to vector<1x128xf32>
      %24 = arith.mulf %22, %23 : vector<1x128xf32>
      %25 = arith.mulf %21, %21 : vector<1x128xf32>
      %26 = arith.subf %24, %25 : vector<1x128xf32>
      %cst_17 = arith.constant 0.000000e+00 : f32
      %27 = vector.broadcast %cst_17 : f32 to vector<1x128xf32>
      %28 = arith.maximumf %26, %27 : vector<1x128xf32>
      %c0_18 = arith.constant 0 : index
      %c0_19 = arith.constant 0 : index
      %29 = vector.load %arg4[%c0_18, %c0_19] : memref<1x128xf32, #tpu.memory_space<vmem>>, vector<1x128xf32>
      %cst_20 = arith.constant 9.99999974E-6 : f32
      %30 = vector.broadcast %cst_20 : f32 to vector<1x128xf32>
      %31 = arith.addf %28, %30 : vector<1x128xf32>
      %32 = math.rsqrt %31 : vector<1x128xf32>
      %33 = arith.mulf %29, %32 : vector<1x128xf32>
      %c0_21 = arith.constant 0 : index
      %c0_22 = arith.constant 0 : index
      %34 = vector.load %arg9[%c0_21, %c0_22] : memref<1x128xf32, #tpu.memory_space<vmem>>, vector<1x128xf32>
      tpu.vector_store %arg9[%c0_21, %c0_22], %33 {strides = array<i32>} : memref<1x128xf32, #tpu.memory_space<vmem>>, vector<1x128xf32>,
      %c0_23 = arith.constant 0 : index
      %c0_24 = arith.constant 0 : index
      %35 = vector.load %arg5[%c0_23, %c0_24] : memref<1x128xf32, #tpu.memory_space<vmem>>, vector<1x128xf32>
      %36 = arith.mulf %21, %33 : vector<1x128xf32>
      %37 = arith.subf %35, %36 : vector<1x128xf32>
      %c0_25 = arith.constant 0 : index
      %c0_26 = arith.constant 0 : index
      %38 = vector.load %arg10[%c0_25, %c0_26] : memref<1x128xf32, #tpu.memory_space<vmem>>, vector<1x128xf32>
      tpu.vector_store %arg10[%c0_25, %c0_26], %37 {strides = array<i32>} : memref<1x128xf32, #tpu.memory_space<vmem>>, vector<1x128xf32>,
    } else {
    }
    %c1_i32_9 = arith.constant 1 : i32
    %16 = arith.cmpi eq, %arg0, %c1_i32_9 : i32
    %17 = arith.extui %16 : i1 to i32
    %c0_i32_10 = arith.constant 0 : i32
    %18 = arith.cmpi ne, %17, %c0_i32_10 : i32
    scf.if %18 {
      %c0_11 = arith.constant 0 : index
      %c0_12 = arith.constant 0 : index
      %19 = vector.load %arg9[%c0_11, %c0_12] : memref<1x128xf32, #tpu.memory_space<vmem>>, vector<1x128xf32>
      %20 = vector.broadcast %19 : vector<1x128xf32> to vector<32x128xf32>
      %21 = arith.mulf %2, %20 : vector<32x128xf32>
      %c0_13 = arith.constant 0 : index
      %c0_14 = arith.constant 0 : index
      %22 = vector.load %arg10[%c0_13, %c0_14] : memref<1x128xf32, #tpu.memory_space<vmem>>, vector<1x128xf32>
      %23 = vector.broadcast %22 : vector<1x128xf32> to vector<32x128xf32>
      %24 = arith.addf %21, %23 : vector<32x128xf32>
      %cst_15 = arith.constant 0.000000e+00 : f32
      %25 = vector.broadcast %cst_15 : f32 to vector<32x128xf32>
      %26 = arith.cmpf oge, %24, %25 : vector<32x128xf32>
      %cst_16 = arith.constant 2.000000e-01 : f32
      %27 = vector.broadcast %cst_16 : f32 to vector<32x128xf32>
      %28 = arith.mulf %27, %24 : vector<32x128xf32>
      %29 = arith.select %26, %24, %28 : vector<32x128xi1>, vector<32x128xf32>
      %30 = arith.truncf %29 : vector<32x128xf32> to vector<32x128xbf16>
      %c0_17 = arith.constant 0 : index
      %c0_18 = arith.constant 0 : index
      %31 = vector.load %arg6[%c0_17, %c0_18] : memref<32x128xbf16, #tpu.memory_space<vmem>>, vector<32x128xbf16>
      tpu.vector_store %arg6[%c0_17, %c0_18], %30 {strides = array<i32>} : memref<32x128xbf16, #tpu.memory_space<vmem>>, vector<32x128xbf16>,
    } else {
    }
    return
  }
  func.func @transform_0(%arg0: i32, %arg1: i32) -> (i32, i32) {
    %c0_i32 = arith.constant 0 : i32
    %c0_i32_0 = arith.constant 0 : i32
    return %arg1, %c0_i32 : i32, i32
  }
  func.func @transform_1(%arg0: i32, %arg1: i32) -> (i32, i32) {
    %c0_i32 = arith.constant 0 : i32
    %c0_i32_0 = arith.constant 0 : i32
    %c0_i32_1 = arith.constant 0 : i32
    return %c0_i32, %c0_i32_0 : i32, i32
  }
  func.func @transform_2(%arg0: i32, %arg1: i32) -> (i32, i32) {
    %c0_i32 = arith.constant 0 : i32
    %c0_i32_0 = arith.constant 0 : i32
    %c0_i32_1 = arith.constant 0 : i32
    return %c0_i32, %c0_i32_0 : i32, i32
  }
  func.func @transform_3(%arg0: i32, %arg1: i32) -> (i32, i32) {
    %c0_i32 = arith.constant 0 : i32
    %c0_i32_0 = arith.constant 0 : i32
    %c0_i32_1 = arith.constant 0 : i32
    return %c0_i32, %c0_i32_0 : i32, i32
  }
  func.func @transform_4(%arg0: i32, %arg1: i32) -> (i32, i32) {
    %0 = arith.muli %arg1, %arg0 : i32
    %c0_i32 = arith.constant 0 : i32
    %c0_i32_0 = arith.constant 0 : i32
    return %0, %c0_i32 : i32, i32
  }
}

module attributes {stable_mosaic.version = 11 : i64} {
  func.func @_conv_bn_lrelu_kernel(%arg0: i32, %arg1: i32, %arg2: memref<8x128xbf16, #tpu.memory_space<vmem>>, %arg3: memref<128x128xbf16, #tpu.memory_space<vmem>>, %arg4: memref<1x128xf32, #tpu.memory_space<vmem>>, %arg5: memref<1x128xf32, #tpu.memory_space<vmem>>, %arg6: memref<8x128xf32, #tpu.memory_space<vmem>>, %arg7: memref<1x128xf32, #tpu.memory_space<vmem>>, %arg8: memref<1x128xf32, #tpu.memory_space<vmem>>, %arg9: memref<1x128xf32, #tpu.memory_space<vmem>>, %arg10: memref<1x128xf32, #tpu.memory_space<vmem>>) attributes {dimension_semantics = [#tpu.dimension_semantics<arbitrary>, #tpu.dimension_semantics<arbitrary>], iteration_bounds = array<i64: 2, 1>, scalar_prefetch = 0 : i64, scratch_operands = 4 : i64, tpu.core_type = #tpu.core_type<tc>, window_params = [{transform_indices = @transform_0, window_bounds = array<i64: 8, 128>}, {pipeline_mode = #tpu.pipeline_mode<synchronous>, transform_indices = @transform_1, window_bounds = array<i64: 128, 128>}, {pipeline_mode = #tpu.pipeline_mode<synchronous>, transform_indices = @transform_2, window_bounds = array<i64: 1, 128>}, {pipeline_mode = #tpu.pipeline_mode<synchronous>, transform_indices = @transform_3, window_bounds = array<i64: 1, 128>}, {transform_indices = @transform_4, window_bounds = array<i64: 8, 128>}]} {
    %c0 = arith.constant 0 : index
    %c0_0 = arith.constant 0 : index
    %0 = vector.load %arg2[%c0, %c0_0] : memref<8x128xbf16, #tpu.memory_space<vmem>>, vector<8x128xbf16>
    %c0_1 = arith.constant 0 : index
    %c0_2 = arith.constant 0 : index
    %1 = vector.load %arg3[%c0_1, %c0_2] : memref<128x128xbf16, #tpu.memory_space<vmem>>, vector<128x128xbf16>
    %cst = arith.constant dense<0.000000e+00> : vector<8x128xf32>
    %2 = tpu.matmul %0, %1, %cst {dimension_numbers = #tpu.dot_dimension_numbers<[1], [0], [0], [1], [0, 0, 1, 1], [], []>} : vector<8x128xbf16>, vector<128x128xbf16>, vector<8x128xf32> -> vector<8x128xf32>
    %c0_i32 = arith.constant 0 : i32
    %3 = arith.cmpi eq, %arg0, %c0_i32 : i32
    %c0_i32_3 = arith.constant 0 : i32
    %4 = arith.cmpi eq, %arg1, %c0_i32_3 : i32
    %5 = arith.andi %3, %4 : i1
    %6 = arith.extui %5 : i1 to i32
    %c0_i32_4 = arith.constant 0 : i32
    %7 = arith.cmpi ne, %6, %c0_i32_4 : i32
    scf.if %7 {
      %cst_11 = arith.constant 0.000000e+00 : f32
      %19 = vector.broadcast %cst_11 : f32 to vector<1x128xf32>
      %c0_12 = arith.constant 0 : index
      %c0_13 = arith.constant 0 : index
      %20 = vector.load %arg7[%c0_12, %c0_13] : memref<1x128xf32, #tpu.memory_space<vmem>>, vector<1x128xf32>
      tpu.vector_store %arg7[%c0_12, %c0_13], %19 {strides = array<i32>} : memref<1x128xf32, #tpu.memory_space<vmem>>, vector<1x128xf32>,
      %cst_14 = arith.constant 0.000000e+00 : f32
      %21 = vector.broadcast %cst_14 : f32 to vector<1x128xf32>
      %c0_15 = arith.constant 0 : index
      %c0_16 = arith.constant 0 : index
      %22 = vector.load %arg8[%c0_15, %c0_16] : memref<1x128xf32, #tpu.memory_space<vmem>>, vector<1x128xf32>
      tpu.vector_store %arg8[%c0_15, %c0_16], %21 {strides = array<i32>} : memref<1x128xf32, #tpu.memory_space<vmem>>, vector<1x128xf32>,
    } else {
    }
    %c0_i32_5 = arith.constant 0 : i32
    %8 = arith.cmpi eq, %arg0, %c0_i32_5 : i32
    %9 = arith.extui %8 : i1 to i32
    %c0_i32_6 = arith.constant 0 : i32
    %10 = arith.cmpi ne, %9, %c0_i32_6 : i32
    scf.if %10 {
      %c0_11 = arith.constant 0 : index
      %c0_12 = arith.constant 0 : index
      %19 = vector.load %arg7[%c0_11, %c0_12] : memref<1x128xf32, #tpu.memory_space<vmem>>, vector<1x128xf32>
      %cst_13 = arith.constant dense<0.000000e+00> : vector<128xf32>
      %20 = vector.multi_reduction <add>, %2, %cst_13 [0] : vector<8x128xf32> to vector<128xf32>
      %21 = vector.shape_cast %20 : vector<128xf32> to vector<1x128xf32>
      %22 = arith.addf %19, %21 : vector<1x128xf32>
      %c0_14 = arith.constant 0 : index
      %c0_15 = arith.constant 0 : index
      %23 = vector.load %arg7[%c0_14, %c0_15] : memref<1x128xf32, #tpu.memory_space<vmem>>, vector<1x128xf32>
      tpu.vector_store %arg7[%c0_14, %c0_15], %22 {strides = array<i32>} : memref<1x128xf32, #tpu.memory_space<vmem>>, vector<1x128xf32>,
      %c0_16 = arith.constant 0 : index
      %c0_17 = arith.constant 0 : index
      %24 = vector.load %arg8[%c0_16, %c0_17] : memref<1x128xf32, #tpu.memory_space<vmem>>, vector<1x128xf32>
      %25 = arith.mulf %2, %2 : vector<8x128xf32>
      %cst_18 = arith.constant dense<0.000000e+00> : vector<128xf32>
      %26 = vector.multi_reduction <add>, %25, %cst_18 [0] : vector<8x128xf32> to vector<128xf32>
      %27 = vector.shape_cast %26 : vector<128xf32> to vector<1x128xf32>
      %28 = arith.addf %24, %27 : vector<1x128xf32>
      %c0_19 = arith.constant 0 : index
      %c0_20 = arith.constant 0 : index
      %29 = vector.load %arg8[%c0_19, %c0_20] : memref<1x128xf32, #tpu.memory_space<vmem>>, vector<1x128xf32>
      tpu.vector_store %arg8[%c0_19, %c0_20], %28 {strides = array<i32>} : memref<1x128xf32, #tpu.memory_space<vmem>>, vector<1x128xf32>,
    } else {
    }
    %c1_i32 = arith.constant 1 : i32
    %11 = arith.cmpi eq, %arg0, %c1_i32 : i32
    %c0_i32_7 = arith.constant 0 : i32
    %12 = arith.cmpi eq, %arg1, %c0_i32_7 : i32
    %13 = arith.andi %11, %12 : i1
    %14 = arith.extui %13 : i1 to i32
    %c0_i32_8 = arith.constant 0 : i32
    %15 = arith.cmpi ne, %14, %c0_i32_8 : i32
    scf.if %15 {
      %c0_11 = arith.constant 0 : index
      %c0_12 = arith.constant 0 : index
      %19 = vector.load %arg7[%c0_11, %c0_12] : memref<1x128xf32, #tpu.memory_space<vmem>>, vector<1x128xf32>
      %cst_13 = arith.constant 1.250000e-01 : f32
      %20 = vector.broadcast %cst_13 : f32 to vector<1x128xf32>
      %21 = arith.mulf %19, %20 : vector<1x128xf32>
      %c0_14 = arith.constant 0 : index
      %c0_15 = arith.constant 0 : index
      %22 = vector.load %arg8[%c0_14, %c0_15] : memref<1x128xf32, #tpu.memory_space<vmem>>, vector<1x128xf32>
      %cst_16 = arith.constant 1.250000e-01 : f32
      %23 = vector.broadcast %cst_16 : f32 to vector<1x128xf32>
      %24 = arith.mulf %22, %23 : vector<1x128xf32>
      %25 = arith.mulf %21, %21 : vector<1x128xf32>
      %26 = arith.subf %24, %25 : vector<1x128xf32>
      %cst_17 = arith.constant 0.000000e+00 : f32
      %27 = vector.broadcast %cst_17 : f32 to vector<1x128xf32>
      %28 = arith.maximumf %26, %27 : vector<1x128xf32>
      %c0_18 = arith.constant 0 : index
      %c0_19 = arith.constant 0 : index
      %29 = vector.load %arg4[%c0_18, %c0_19] : memref<1x128xf32, #tpu.memory_space<vmem>>, vector<1x128xf32>
      %cst_20 = arith.constant 9.99999974E-6 : f32
      %30 = vector.broadcast %cst_20 : f32 to vector<1x128xf32>
      %31 = arith.addf %28, %30 : vector<1x128xf32>
      %32 = math.rsqrt %31 : vector<1x128xf32>
      %33 = arith.mulf %29, %32 : vector<1x128xf32>
      %c0_21 = arith.constant 0 : index
      %c0_22 = arith.constant 0 : index
      %34 = vector.load %arg9[%c0_21, %c0_22] : memref<1x128xf32, #tpu.memory_space<vmem>>, vector<1x128xf32>
      tpu.vector_store %arg9[%c0_21, %c0_22], %33 {strides = array<i32>} : memref<1x128xf32, #tpu.memory_space<vmem>>, vector<1x128xf32>,
      %c0_23 = arith.constant 0 : index
      %c0_24 = arith.constant 0 : index
      %35 = vector.load %arg5[%c0_23, %c0_24] : memref<1x128xf32, #tpu.memory_space<vmem>>, vector<1x128xf32>
      %36 = arith.mulf %21, %33 : vector<1x128xf32>
      %37 = arith.subf %35, %36 : vector<1x128xf32>
      %c0_25 = arith.constant 0 : index
      %c0_26 = arith.constant 0 : index
      %38 = vector.load %arg10[%c0_25, %c0_26] : memref<1x128xf32, #tpu.memory_space<vmem>>, vector<1x128xf32>
      tpu.vector_store %arg10[%c0_25, %c0_26], %37 {strides = array<i32>} : memref<1x128xf32, #tpu.memory_space<vmem>>, vector<1x128xf32>,
    } else {
    }
    %c1_i32_9 = arith.constant 1 : i32
    %16 = arith.cmpi eq, %arg0, %c1_i32_9 : i32
    %17 = arith.extui %16 : i1 to i32
    %c0_i32_10 = arith.constant 0 : i32
    %18 = arith.cmpi ne, %17, %c0_i32_10 : i32
    scf.if %18 {
      %c0_11 = arith.constant 0 : index
      %c0_12 = arith.constant 0 : index
      %19 = vector.load %arg9[%c0_11, %c0_12] : memref<1x128xf32, #tpu.memory_space<vmem>>, vector<1x128xf32>
      %20 = vector.broadcast %19 : vector<1x128xf32> to vector<8x128xf32>
      %21 = arith.mulf %2, %20 : vector<8x128xf32>
      %c0_13 = arith.constant 0 : index
      %c0_14 = arith.constant 0 : index
      %22 = vector.load %arg10[%c0_13, %c0_14] : memref<1x128xf32, #tpu.memory_space<vmem>>, vector<1x128xf32>
      %23 = vector.broadcast %22 : vector<1x128xf32> to vector<8x128xf32>
      %24 = arith.addf %21, %23 : vector<8x128xf32>
      %cst_15 = arith.constant 0.000000e+00 : f32
      %25 = vector.broadcast %cst_15 : f32 to vector<8x128xf32>
      %26 = arith.cmpf oge, %24, %25 : vector<8x128xf32>
      %cst_16 = arith.constant 2.000000e-01 : f32
      %27 = vector.broadcast %cst_16 : f32 to vector<8x128xf32>
      %28 = arith.mulf %27, %24 : vector<8x128xf32>
      %29 = arith.select %26, %24, %28 : vector<8x128xi1>, vector<8x128xf32>
      %c0_17 = arith.constant 0 : index
      %c0_18 = arith.constant 0 : index
      %30 = vector.load %arg6[%c0_17, %c0_18] : memref<8x128xf32, #tpu.memory_space<vmem>>, vector<8x128xf32>
      tpu.vector_store %arg6[%c0_17, %c0_18], %29 {strides = array<i32>} : memref<8x128xf32, #tpu.memory_space<vmem>>, vector<8x128xf32>,
    } else {
    }
    return
  }
  func.func @transform_0(%arg0: i32, %arg1: i32) -> (i32, i32) {
    %c0_i32 = arith.constant 0 : i32
    %c0_i32_0 = arith.constant 0 : i32
    return %arg1, %c0_i32 : i32, i32
  }
  func.func @transform_1(%arg0: i32, %arg1: i32) -> (i32, i32) {
    %c0_i32 = arith.constant 0 : i32
    %c0_i32_0 = arith.constant 0 : i32
    %c0_i32_1 = arith.constant 0 : i32
    return %c0_i32, %c0_i32_0 : i32, i32
  }
  func.func @transform_2(%arg0: i32, %arg1: i32) -> (i32, i32) {
    %c0_i32 = arith.constant 0 : i32
    %c0_i32_0 = arith.constant 0 : i32
    %c0_i32_1 = arith.constant 0 : i32
    return %c0_i32, %c0_i32_0 : i32, i32
  }
  func.func @transform_3(%arg0: i32, %arg1: i32) -> (i32, i32) {
    %c0_i32 = arith.constant 0 : i32
    %c0_i32_0 = arith.constant 0 : i32
    %c0_i32_1 = arith.constant 0 : i32
    return %c0_i32, %c0_i32_0 : i32, i32
  }
  func.func @transform_4(%arg0: i32, %arg1: i32) -> (i32, i32) {
    %0 = arith.muli %arg1, %arg0 : i32
    %c0_i32 = arith.constant 0 : i32
    %c0_i32_0 = arith.constant 0 : i32
    return %0, %c0_i32 : i32, i32
  }
}

</mosaic_0001>

<bundles_post_ra>
// kernel: discriminator_forward.3
= control target key start
LH: loop header
LB: loop body
LE: loop exit
PB: predicated region body
PF: predicated region fallthrough
CT: control target
= control target key end

     0   :  { %s977_s15 = smov 0   ;;  %s979_s16 = smov 0   ;;  %s1209_s0 = inlined_call_operand.vmem [shape: bf16[128,16], index: 0, kind: input, shape index: {}]   ;;  %s1210_s1 = inlined_call_operand.vmem [shape: bf16[16,128], index: 1, kind: input, shape index: {}]   ;;  %s1211_s2 = inlined_call_operand.vmem [shape: f32[1,128], index: 2, kind: input, shape index: {}]   ;;  %s1212_s3 = inlined_call_operand.vmem [shape: f32[1,128], index: 3, kind: input, shape index: {}]   ;;  %s1213_s4 = inlined_call_operand.vmem [shape: bf16[128,128], index: 4, kind: output, shape index: {}]  }
   0x1   :  { %s981_s17 = smov 0  }
   0x2 LB: > { %s26_s18 = sadd.s32 1, %s945_s16  ;;  %p753_p0 = scmp.ge.s32.totalorder %s949_s17, 1  ;;  %s949_s17 = sphi %s981_s17, %s14_s17   ;;  %s945_s16 = sphi %s979_s16, %s1215_s16   ;;  %s941_s15 = sphi %s977_s15, %s1214_s15  }
   0x3   : > { %p28_p1 = scmp.ge.s32.totalorder %s26_s18, 2  ;;  %p177_p2 = scmp.lt.s32.totalorder %s949_s17, 3 }
   0x5   : > { %s1217_s18 = smov (%p28_p1, %s26_s18), 0  ;;  %p178_p3 = pnand %p753_p0, %p177_p2 }
   0x6   : > { %v916_v0 = vld [vmem:[%s1210_s1] sm:$0xff] (!%p178_p3)   ;;  %vm283_vm0 = vcmask (!%p178_p3), 130048   ;;  %v919_v3 = vld [vmem:[%s1209_s0 + $0x8] sm:$0xff] (!%p178_p3)   ;;  %v921_v5 = vld [vmem:[%s1209_s0 + $0x10] sm:$0xff] (!%p178_p3)   ;;  %p405_p4 = scmp.eq.s32.totalorder (!%p178_p3), %s941_s15, 0 }
   0x7   : > { %181 = sbr.rel (%p178_p3) target bundleno = 345 (0x159), region = 36  ;;  %v917_v1 = vld [vmem:[%s1209_s0] sm:$0xff] (!%p178_p3)   ;;  %871 = vmatprep.subr.bf16.mxu0 (!%p178_p3), %v916_v0  ;;  %889 = vmatprep.subr.bf16.mxu1 (!%p178_p3), %v916_v0  ;;  %v920_v4 = vld [vmem:[%s1209_s0 + $0x28] sm:$0xff] (!%p178_p3)   ;;  %v922_v6 = vld [vmem:[%s1209_s0 + $0x30] sm:$0xff] (!%p178_p3)  }
   0x8   : > { %v918_v2 = vld [vmem:[%s1209_s0 + $0x20] sm:$0xff] (!%p178_p3)   ;;  %872 = vmatpush3.bf16.msra.mxu0 (!%p178_p3), %v916_v0  ;;  %890 = vmatpush3.bf16.msra.mxu1 (!%p178_p3), %v916_v0  ;;  %v923_v7 = vld [vmem:[%s1209_s0 + $0x18] sm:$0xff] (!%p178_p3)  }
   0x9   : > { %873 = vmatprep.mubr.msk.bf16.mxu0 (!%p178_p3), %vm283_vm0, %v917_v1  ;;  %881 = vmatprep.mubr.msk.bf16.mxu1 (!%p178_p3), %vm283_vm0, %v918_v2  ;;  %v924_v8 = vld [vmem:[%s1209_s0 + $0x38] sm:$0xff] (!%p178_p3)  }
   0xb   : > { %874 = vmatmul.mubr.msk.bf16.vlgmr.msra.gmra.mrb[0].mxu0 (!%p178_p3), %vm283_vm0, %v919_v3  ;;  %882 = vmatmul.mubr.msk.bf16.vlgmr.msra.gmra.mrb[0].mxu1 (!%p178_p3), %vm283_vm0, %v920_v4 }
   0xc   : > { %877 = vmatprep.mubr.msk.bf16.mxu0 (!%p178_p3), %vm283_vm0, %v921_v5  ;;  %885 = vmatprep.mubr.msk.bf16.mxu1 (!%p178_p3), %vm283_vm0, %v922_v6 }
   0xe   : > { %v951_v25 = vmov (%p405_p4), 0.0  }
   0xf   : > { %411 = vst [vmem:[#allocation2] sm:$0x1] (%p405_p4), %v951_v25  ;;  %412 = vst [vmem:[#allocation3] sm:$0x1] (%p405_p4), %v951_v25 }
  0x13   : > { %878 = vmatmul.mubr.msk.bf16.gmra.mrb[4].mxu0 %vm283_vm0, %v923_v7  ;;  %886 = vmatmul.mubr.msk.bf16.gmra.mrb[4].mxu1 %vm283_vm0, %v924_v8 }
  0xde   : > { %v1033_v9 = vpop.f32.mrb[0].mxu0  ;;  %v1035_v10 = vpop.f32.mrb[0].mxu1 }
  0xdf   : > { %v1037_v11 = vpop.f32.mrb[1].mxu0  ;;  %v1039_v12 = vpop.f32.mrb[1].mxu1 }
  0xe0   : > { %v1041_v13 = vpop.f32.mrb[2].mxu0  ;;  %v1043_v14 = vpop.f32.mrb[2].mxu1 }
  0xe1   : > { %v1045_v15 = vpop.f32.mrb[3].mxu0  ;;  %v1047_v16 = vpop.f32.mrb[3].mxu1 }
  0xe3   : > { %410 = sbr.rel (!%p405_p4) target bundleno = 234 (0xea), region = 40 }
  0xe6   : > { %v1049_v17 = vpop.f32.mrb[4].mxu0  ;;  %v1051_v18 = vpop.f32.mrb[4].mxu1 }
  0xe7   : > { %v1053_v19 = vpop.f32.mrb[5].mxu0  ;;  %v1055_v20 = vpop.f32.mrb[5].mxu1 }
  0xe8   : > { %v1057_v21 = vpop.f32.mrb[6].mxu0  ;;  %v1059_v22 = vpop.f32.mrb[6].mxu1 }
  0xe9   : > { %v1061_v23 = vpop.f32.mrb[7].mxu0  ;;  %v1063_v24 = vpop.f32.mrb[7].mxu1 }
  0xea PF: > { %p772_p5 = scmp.ne.s32.totalorder %s941_s15, 0 }
  0xeb   : > { %v417_v26 = vadd.f32 (!%p772_p5), %v1045_v15, %v1037_v11  ;;  %v441_v27 = vmul.f32 (!%p772_p5), %v1037_v11, %v1037_v11  ;;  %v442_v28 = vmul.f32 (!%p772_p5), %v1045_v15, %v1045_v15  ;;  %v443_v30 = vmul.f32 (!%p772_p5), %v1033_v9, %v1033_v9 }
  0xec   : > { %415 = sbr.rel (%p772_p5) target bundleno = 282 (0x11a), region = 44  ;;  %v444_v32 = vmul.f32 (!%p772_p5), %v1041_v13, %v1041_v13  ;;  %v445_v35 = vmul.f32 (!%p772_p5), %v1053_v19, %v1053_v19  ;;  %v446_v38 = vmul.f32 (!%p772_p5), %v1061_v23, %v1061_v23  ;;  %v447_v41 = vmul.f32 (!%p772_p5), %v1049_v17, %v1049_v17 }
  0xed   : > { %v418_v29 = vadd.f32 (!%p772_p5), %v1033_v9, %v417_v26  ;;  %v457_v33 = vadd.f32 (!%p772_p5), %v442_v28, %v441_v27  ;;  %v448_v44 = vmul.f32 (!%p772_p5), %v1057_v21, %v1057_v21  ;;  %v449_v47 = vmul.f32 (!%p772_p5), %v1039_v12, %v1039_v12 }
  0xee   : > { %v450_v50 = vmul.f32 (!%p772_p5), %v1047_v16, %v1047_v16  ;;  %v451_v53 = vmul.f32 (!%p772_p5), %v1035_v10, %v1035_v10  ;;  %v452_v56 = vmul.f32 (!%p772_p5), %v1043_v14, %v1043_v14  ;;  %v453_v59 = vmul.f32 (!%p772_p5), %v1055_v20, %v1055_v20 }
  0xef   : > { %v419_v31 = vadd.f32 (!%p772_p5), %v1041_v13, %v418_v29  ;;  %v458_v36 = vadd.f32 (!%p772_p5), %v457_v33, %v443_v30  ;;  %v454_v62 = vmul.f32 (!%p772_p5), %v1063_v24, %v1063_v24  ;;  %v455_v1 = vmul.f32 (!%p772_p5), %v1051_v18, %v1051_v18 }
  0xf0   : > { %v456_v4 = vmul.f32 (!%p772_p5), %v1059_v22, %v1059_v22 }
  0xf1   : > { %v420_v34 = vadd.f32 (!%p772_p5), %v419_v31, %v1053_v19  ;;  %v459_v39 = vadd.f32 (!%p772_p5), %v458_v36, %v444_v32  ;;  %v416_v32 = vld [vmem:[#allocation2] sm:$0x1] (!%p772_p5) }
  0xf3   : > { %v421_v37 = vadd.f32 %v420_v34, %v1061_v23  ;;  %v460_v42 = vadd.f32 %v459_v39, %v445_v35 }
  0xf5   : > { %v422_v40 = vadd.f32 %v1049_v17, %v421_v37  ;;  %v461_v45 = vadd.f32 %v460_v42, %v446_v38  ;;  %v440_v37 = vld [vmem:[#allocation3] sm:$0x1] }
  0xf7   : > { %v423_v43 = vadd.f32 %v1057_v21, %v422_v40  ;;  %v462_v48 = vadd.f32 %v461_v45, %v447_v41 }
  0xf9   : > { %v424_v46 = vadd.f32 %v423_v43, %v1039_v12  ;;  %v463_v51 = vadd.f32 %v462_v48, %v448_v44 }
  0xfb   : > { %v425_v49 = vadd.f32 %v424_v46, %v1047_v16  ;;  %v464_v54 = vadd.f32 %v463_v51, %v449_v47 }
  0xfd   : > { %v426_v52 = vadd.f32 %v1035_v10, %v425_v49  ;;  %v465_v57 = vadd.f32 %v464_v54, %v450_v50 }
  0xff   : > { %v427_v55 = vadd.f32 %v1043_v14, %v426_v52  ;;  %v466_v60 = vadd.f32 %v465_v57, %v451_v53 }
 0x101   : > { %v428_v58 = vadd.f32 %v427_v55, %v1055_v20  ;;  %v467_v63 = vadd.f32 %v466_v60, %v452_v56 }
 0x103   : > { %v429_v61 = vadd.f32 %v428_v58, %v1063_v24  ;;  %v468_v2 = vadd.f32 %v467_v63, %v453_v59 }
 0x105   : > { %v430_v0 = vadd.f32 %v1051_v18, %v429_v61  ;;  %v469_v5 = vadd.f32 %v468_v2, %v454_v62 }
 0x107   : > { %v431_v3 = vadd.f32 %v1059_v22, %v430_v0  ;;  %v470_v7 = vadd.f32 %v469_v5, %v455_v1 }
 0x109   : > { %v432_v6 = vrot.slane %v431_v3, 4  ;;  %v471_v25 = vadd.f32 %v470_v7, %v456_v4 }
 0x10b   : > { %v433_v8 = vadd.f32 %v432_v6, %v431_v3  ;;  %v472_v27 = vrot.slane %v471_v25, 4 }
 0x10d   : > { %v434_v26 = vrot.slane %v433_v8, 2  ;;  %v473_v29 = vadd.f32 %v472_v27, %v471_v25 }
 0x10f   : > { %v435_v28 = vadd.f32 %v434_v26, %v433_v8  ;;  %v474_v31 = vrot.slane %v473_v29, 2 }
 0x111   : > { %v436_v30 = vrot.slane %v435_v28, 1  ;;  %v475_v34 = vadd.f32 %v474_v31, %v473_v29 }
 0x113   : > { %v437_v33 = vadd.f32 %v436_v30, %v435_v28  ;;  %v476_v36 = vrot.slane %v475_v34, 1 }
 0x115   : > { %v438_v35 = vadd.f32 %v437_v33, %v416_v32  ;;  %v477_v38 = vadd.f32 %v476_v36, %v475_v34 }
 0x117   : > { %439 = vst [vmem:[#allocation2] sm:$0x1] %v438_v35  ;;  %v478_v39 = vadd.f32 %v477_v38, %v440_v37 }
 0x119   : > { %479 = vst [vmem:[#allocation3] sm:$0x1] %v478_v39 }
 0x11a PF: > { %p480_p6 = scmp.eq.s32.totalorder %s941_s15, 1 }
 0x11b   : > { %v492_v48 = vld [vmem:[%s1211_s2] sm:$0x1] (%p480_p6) }
 0x11c   : > { %484 = sbr.rel (!%p480_p6) target bundleno = 315 (0x13b), region = 48  ;;  %v497_v51 = vld [vmem:[%s1212_s3] sm:$0x1] (%p480_p6) }
 0x11e   : > { %v485_v40 = vld [vmem:[#allocation2] sm:$0x1] (%p480_p6) }
 0x11f   : > { %v486_v42 = vmul.f32 (%p480_p6), 0.0078125, %v485_v40 }
 0x120   : > { %v487_v41 = vld [vmem:[#allocation3] sm:$0x1] (%p480_p6) }
 0x121   : > { %v488_v43 = vmul.f32 (%p480_p6), 0.0078125, %v487_v41  ;;  %v489_v44 = vmul.f32 (%p480_p6), %v486_v42, %v486_v42 }
 0x123   : > { %v490_v45 = vsub.f32 %v488_v43, %v489_v44 }
 0x125   : > { %v491_v46 = vmax.f32 %v490_v45, 0.0 }
 0x127   : > { %v493_v47 = vadd.f32 1e-05, %v491_v46 }
 0x129   : > { %925 = vrsqrt.f32 %v493_v47 }
 0x133   : > { %v926_v49 = vpop.eup %925 }
 0x134   : > { %v495_v50 = vmul.f32 %v926_v49, %v492_v48 }
 0x136   : > { %496 = vst [vmem:[#allocation4] sm:$0x1] %v495_v50  ;;  %v498_v52 = vmul.f32 %v495_v50, %v486_v42 }
 0x138   : > { %v499_v53 = vsub.f32 %v497_v51, %v498_v52 }
 0x13a   : > { %500 = vst [vmem:[#allocation5] sm:$0x1] %v499_v53 }
 0x13b PF: > { %p774_p7 = scmp.ne.s32.totalorder %s941_s15, 1 }
 0x13d   : > { %503 = sbr.rel (%p774_p7) target bundleno = 345 (0x159), region = 52  ;;  %v1124_v54 = vld [vmem:[#allocation4] ss:$0 sm:$0xff] (!%p774_p7) }
 0x13e   : > { %v511_v56 = vmul.f32 (!%p774_p7), %v1124_v54, %v1037_v11  ;;  %v512_v57 = vmul.f32 (!%p774_p7), %v1124_v54, %v1045_v15  ;;  %v513_v58 = vmul.f32 (!%p774_p7), %v1033_v9, %v1124_v54  ;;  %v514_v59 = vmul.f32 (!%p774_p7), %v1041_v13, %v1124_v54 }
 0x13f   : > { %v515_v60 = vmul.f32 (!%p774_p7), %v1124_v54, %v1053_v19  ;;  %v516_v61 = vmul.f32 (!%p774_p7), %v1124_v54, %v1061_v23  ;;  %v517_v62 = vmul.f32 (!%p774_p7), %v1049_v17, %v1124_v54  ;;  %v518_v11 = vmul.f32 (!%p774_p7), %v1057_v21, %v1124_v54 }
 0x140   : > { %v519_v31 = vmul.f32 (!%p774_p7), %v1124_v54, %v1039_v12  ;;  %v520_v33 = vmul.f32 (!%p774_p7), %v1124_v54, %v1047_v16  ;;  %v521_v34 = vmul.f32 (!%p774_p7), %v1035_v10, %v1124_v54  ;;  %v522_v35 = vmul.f32 (!%p774_p7), %v1043_v14, %v1124_v54 }
 0x141   : > { %v1126_v55 = vld [vmem:[#allocation5] ss:$0 sm:$0xff] (!%p774_p7)  ;;  %v523_v14 = vmul.f32 (!%p774_p7), %v1124_v54, %v1055_v20  ;;  %v524_v16 = vmul.f32 (!%p774_p7), %v1124_v54, %v1063_v24  ;;  %v525_v20 = vmul.f32 (!%p774_p7), %v1051_v18, %v1124_v54  ;;  %v526_v24 = vmul.f32 (!%p774_p7), %v1059_v22, %v1124_v54 }
 0x142   : > { %v534_v15 = vadd.f32 (!%p774_p7), %v1126_v55, %v511_v56  ;;  %v535_v63 = vadd.f32 (!%p774_p7), %v1126_v55, %v512_v57  ;;  %v536_v9 = vadd.f32 (!%p774_p7), %v1126_v55, %v513_v58  ;;  %v537_v13 = vadd.f32 (!%p774_p7), %v1126_v55, %v514_v59 }
 0x143   : > { %v538_v0 = vadd.f32 (!%p774_p7), %v1126_v55, %v515_v60  ;;  %v539_v19 = vadd.f32 (!%p774_p7), %v1126_v55, %v516_v61  ;;  %v540_v23 = vadd.f32 (!%p774_p7), %v1126_v55, %v517_v62  ;;  %v541_v1 = vadd.f32 (!%p774_p7), %v1126_v55, %v518_v11 }
 0x144   : > { %vm550_vm1 = vcmp.ge.f32.partialorder %v534_v15, 0.0  ;;  %vm551_vm2 = vcmp.ge.f32.partialorder %v535_v63, 0.0  ;;  %v566_v17 = vmul.f32 0.2, %v534_v15  ;;  %v567_v21 = vmul.f32 0.2, %v535_v63 }
 0x145   : > { %vm552_vm3 = vcmp.ge.f32.partialorder %v536_v9, 0.0  ;;  %vm553_vm4 = vcmp.ge.f32.partialorder %v537_v13, 0.0  ;;  %v568_v2 = vmul.f32 0.2, %v536_v9  ;;  %v569_v3 = vmul.f32 0.2, %v537_v13 }
 0x146   : > { %v582_v4 = vsel %vm550_vm1, %v534_v15, %v566_v17  ;;  %v583_v5 = vsel %vm551_vm2, %v535_v63, %v567_v21  ;;  %vm554_vm5 = vcmp.ge.f32.partialorder %v538_v0, 0.0  ;;  %vm555_vm6 = vcmp.ge.f32.partialorder %v539_v19, 0.0 }
 0x147   : > { %v818_v6 = vpack.c.bf16 %v583_v5, %v582_v4  ;;  %v584_v7 = vsel %vm552_vm3, %v536_v9, %v568_v2  ;;  %v585_v8 = vsel %vm553_vm4, %v537_v13, %v569_v3  ;;  %v570_v25 = vmul.f32 0.2, %v538_v0 }
 0x148   : > { %v823_v26 = vpack.c.bf16 %v585_v8, %v584_v7  ;;  %v571_v27 = vmul.f32 0.2, %v539_v19  ;;  %vm556_vm7 = vcmp.ge.f32.partialorder %v540_v23, 0.0  ;;  %vm557_vm8 = vcmp.ge.f32.partialorder %v541_v1, 0.0 }
 0x149   : > { %819 = vst [vmem:[%s1213_s4] sm:$0xff] %v818_v6   ;;  %v586_v28 = vsel %vm554_vm5, %v538_v0, %v570_v25  ;;  %v572_v29 = vmul.f32 0.2, %v540_v23  ;;  %v573_v30 = vmul.f32 0.2, %v541_v1  ;;  %v542_v39 = vadd.f32 %v1126_v55, %v519_v31 }
 0x14a   : > { %855 = vst [vmem:[%s1213_s4 + $0x8] sm:$0xff] %v823_v26   ;;  %v587_v32 = vsel %vm555_vm6, %v539_v19, %v571_v27  ;;  %v543_v40 = vadd.f32 %v1126_v55, %v520_v33  ;;  %v544_v41 = vadd.f32 %v1126_v55, %v521_v34  ;;  %v545_v42 = vadd.f32 %v1126_v55, %v522_v35 }
 0x14b   : > { %v828_v36 = vpack.c.bf16 %v587_v32, %v586_v28  ;;  %v588_v37 = vsel %vm556_vm7, %v540_v23, %v572_v29  ;;  %v589_v38 = vsel %vm557_vm8, %v541_v1, %v573_v30  ;;  %vm558_vm9 = vcmp.ge.f32.partialorder %v542_v39, 0.0 }
 0x14c   : > { %v833_v12 = vpack.c.bf16 %v589_v38, %v588_v37  ;;  %v574_v10 = vmul.f32 0.2, %v542_v39  ;;  %vm559_vm10 = vcmp.ge.f32.partialorder %v543_v40, 0.0  ;;  %v575_v43 = vmul.f32 0.2, %v543_v40 }
 0x14d   : > { %856 = vst [vmem:[%s1213_s4 + $0x10] sm:$0xff] %v828_v36   ;;  %vm560_vm11 = vcmp.ge.f32.partialorder %v544_v41, 0.0  ;;  %vm561_vm12 = vcmp.ge.f32.partialorder %v545_v42, 0.0  ;;  %v576_v45 = vmul.f32 0.2, %v544_v41  ;;  %v546_v47 = vadd.f32 %v1126_v55, %v523_v14 }
 0x14e   : > { %857 = vst [vmem:[%s1213_s4 + $0x18] sm:$0xff] %v833_v12   ;;  %v590_v44 = vsel %vm558_vm9, %v542_v39, %v574_v10  ;;  %v577_v46 = vmul.f32 0.2, %v545_v42  ;;  %v591_v48 = vsel %vm559_vm10, %v543_v40, %v575_v43  ;;  %v547_v49 = vadd.f32 %v1126_v55, %v524_v16 }
 0x14f   : > { %v838_v50 = vpack.c.bf16 %v591_v48, %v590_v44  ;;  %v592_v51 = vsel %vm560_vm11, %v544_v41, %v576_v45  ;;  %vm562_vm13 = vcmp.ge.f32.partialorder %v546_v47, 0.0  ;;  %v578_v56 = vmul.f32 0.2, %v546_v47 }
 0x150   : > { %v593_v52 = vsel %vm561_vm12, %v545_v42, %v577_v46  ;;  %vm563_vm14 = vcmp.ge.f32.partialorder %v547_v49, 0.0  ;;  %v579_v57 = vmul.f32 0.2, %v547_v49  ;;  %v548_v58 = vadd.f32 %v1126_v55, %v525_v20 }
 0x151   : > { %v843_v53 = vpack.c.bf16 %v593_v52, %v592_v51  ;;  %858 = vst [vmem:[%s1213_s4 + $0x20] sm:$0xff] %v838_v50   ;;  %v549_v59 = vadd.f32 %v1126_v55, %v526_v24  ;;  %v594_v18 = vsel %vm562_vm13, %v546_v47, %v578_v56 }
 0x152   : > { %v595_v22 = vsel %vm563_vm14, %v547_v49, %v579_v57  ;;  %vm564_vm15 = vcmp.ge.f32.partialorder %v548_v58, 0.0  ;;  %v580_v60 = vmul.f32 0.2, %v548_v58 }
 0x153   : > { %859 = vst [vmem:[%s1213_s4 + $0x28] sm:$0xff] %v843_v53   ;;  %v848_v54 = vpack.c.bf16 %v595_v22, %v594_v18  ;;  %vm565_vm0 = vcmp.ge.f32.partialorder %v549_v59, 0.0  ;;  %v581_v61 = vmul.f32 0.2, %v549_v59 }
 0x154   : > { %v596_v62 = vsel %vm564_vm15, %v548_v58, %v580_v60 }
 0x155   : > { %860 = vst [vmem:[%s1213_s4 + $0x30] sm:$0xff] %v848_v54   ;;  %v597_v11 = vsel %vm565_vm0, %v549_v59, %v581_v61 }
 0x156   : > { %v853_v15 = vpack.c.bf16 %v597_v11, %v596_v62 }
 0x158   : > { %861 = vst [vmem:[%s1213_s4 + $0x38] sm:$0xff] %v853_v15  }
 0x159 PF: > { %s14_s17 = sadd.s32 1, %s949_s17   ;;  %s1214_s15 = smov %s945_s16 }
 0x15a   : > { %p11_p8 = scmp.ge.s32.totalorder %s14_s17, 4   ;;  %s1215_s16 = smov %s1217_s18 }
 0x15c   :  { %13 = sbr.rel (!%p11_p8) target bundleno = 2 (0x2), region = 82 }

// kernel: discriminator_forward.4
= control target key start
LH: loop header
LB: loop body
LE: loop exit
PB: predicated region body
PF: predicated region fallthrough
CT: control target
= control target key end

     0   :  { %s654_s15 = smov 0   ;;  %s656_s16 = smov 0   ;;  %s735_s0 = inlined_call_operand.vmem [shape: bf16[32,64], index: 0, kind: input, shape index: {}]   ;;  %s736_s1 = inlined_call_operand.vmem [shape: bf16[64,128], index: 1, kind: input, shape index: {}]   ;;  %s737_s2 = inlined_call_operand.vmem [shape: f32[1,128], index: 2, kind: input, shape index: {}]   ;;  %s738_s3 = inlined_call_operand.vmem [shape: f32[1,128], index: 3, kind: input, shape index: {}]   ;;  %s739_s4 = inlined_call_operand.vmem [shape: bf16[32,128], index: 4, kind: output, shape index: {}]  }
   0x1   :  { %s658_s17 = smov 0  }
   0x2 LB: > { %s26_s18 = sadd.s32 1, %s622_s16  ;;  %p513_p0 = scmp.ge.s32.totalorder %s626_s17, 1  ;;  %s626_s17 = sphi %s658_s17, %s14_s17   ;;  %s622_s16 = sphi %s656_s16, %s741_s16   ;;  %s618_s15 = sphi %s654_s15, %s740_s15  }
   0x3   : > { %p28_p1 = scmp.ge.s32.totalorder %s26_s18, 2  ;;  %p177_p2 = scmp.lt.s32.totalorder %s626_s17, 3 }
   0x5   : > { %s743_s18 = smov (%p28_p1, %s26_s18), 0  ;;  %p178_p3 = pnand %p513_p0, %p177_p2 }
   0x6   : > { %v596_v0 = vld [vmem:[%s736_s1] sm:$0xff] (!%p178_p3)   ;;  %v597_v1 = vld [vmem:[%s736_s1 + $0x8] sm:$0xff] (!%p178_p3)   ;;  %v598_v2 = vld [vmem:[%s736_s1 + $0x10] sm:$0xff] (!%p178_p3)   ;;  %vm265_vm0 = vcmask (!%p178_p3), 523264   ;;  %p321_p4 = scmp.eq.s32.totalorder (!%p178_p3), %s618_s15, 0 }
   0x7   : > { %181 = sbr.rel (%p178_p3) target bundleno = 311 (0x137), region = 36  ;;  %559 = vmatprep.subr.bf16.mxu0 (!%p178_p3), %v596_v0  ;;  %v600_v3 = vld [vmem:[%s735_s0] sm:$0xff] (!%p178_p3)   ;;  %v599_v4 = vld [vmem:[%s736_s1 + $0x18] sm:$0xff] (!%p178_p3)   ;;  %v601_v5 = vld [vmem:[%s735_s0 + $0x8] sm:$0xff] (!%p178_p3)  }
   0x8   : > { %560 = vmatpush3.bf16.msra.mxu0 (!%p178_p3), %v596_v0  ;;  %567 = vmatprep.mubr.msk.bf16.mxu0 (!%p178_p3), %vm265_vm0, %v600_v3 }
   0x9   : > { %561 = vmatprep.subr.bf16.mxu0 (!%p178_p3), %v597_v1 }
   0xc   : > { %562 = vmatpush3.bf16.msra.mxu0 (!%p178_p3), %v597_v1 }
   0xd   : > { %563 = vmatprep.subr.bf16.mxu0 (!%p178_p3), %v598_v2 }
   0xe   : > { %v628_v10 = vmov (%p321_p4), 0.0  }
   0xf   : > { %327 = vst [vmem:[#allocation2] sm:$0x1] (%p321_p4), %v628_v10  ;;  %328 = vst [vmem:[#allocation3] sm:$0x1] (%p321_p4), %v628_v10 }
  0x10   : > { %564 = vmatpush3.bf16.msra.mxu0 %v598_v2 }
  0x11   : > { %565 = vmatprep.subr.bf16.mxu0 %v599_v4 }
  0x14   : > { %566 = vmatpush3.bf16.msra.mxu0 %v599_v4 }
  0x17   : > { %568 = vmatmul.mubr.msk.bf16.vlgmr.msra.gmra.mrb[0].mxu0 %vm265_vm0, %v601_v5 }
  0xe7   : > { %326 = sbr.rel (!%p321_p4) target bundleno = 238 (0xee), region = 40 }
  0xea   : > { %v693_v6 = vpop.f32.mrb[0].mxu0 }
  0xeb   : > { %v695_v7 = vpop.f32.mrb[1].mxu0 }
  0xec   : > { %v697_v8 = vpop.f32.mrb[2].mxu0 }
  0xed   : > { %v309_v9 = vpop.f32.mrb[3].mxu0 }
  0xee PF: > { %p523_p5 = scmp.ne.s32.totalorder %s618_s15, 0 }
  0xef   : > { %v333_v11 = vadd.f32 (!%p523_p5), %v309_v9, %v695_v7  ;;  %v345_v12 = vmul.f32 (!%p523_p5), %v695_v7, %v695_v7  ;;  %v346_v13 = vmul.f32 (!%p523_p5), %v309_v9, %v309_v9  ;;  %v347_v14 = vmul.f32 (!%p523_p5), %v693_v6, %v693_v6  ;;  %v332_v30 = vld [vmem:[#allocation2] sm:$0x1] (!%p523_p5)  ;;  %v344_v33 = vld [vmem:[#allocation3] sm:$0x1] (!%p523_p5) }
  0xf0   : > { %331 = sbr.rel (%p523_p5) target bundleno = 262 (0x106), region = 44  ;;  %v348_v16 = vmul.f32 (!%p523_p5), %v697_v8, %v697_v8 }
  0xf1   : > { %v334_v15 = vadd.f32 (!%p523_p5), %v693_v6, %v333_v11  ;;  %v349_v17 = vadd.f32 (!%p523_p5), %v346_v13, %v345_v12 }
  0xf3   : > { %v335_v18 = vadd.f32 (!%p523_p5), %v697_v8, %v334_v15  ;;  %v350_v19 = vadd.f32 (!%p523_p5), %v349_v17, %v347_v14 }
  0xf5   : > { %v336_v20 = vrot.slane (!%p523_p5), %v335_v18, 4  ;;  %v351_v21 = vadd.f32 (!%p523_p5), %v350_v19, %v348_v16 }
  0xf7   : > { %v337_v22 = vadd.f32 %v336_v20, %v335_v18  ;;  %v352_v23 = vrot.slane %v351_v21, 4 }
  0xf9   : > { %v338_v24 = vrot.slane %v337_v22, 2  ;;  %v353_v25 = vadd.f32 %v352_v23, %v351_v21 }
  0xfb   : > { %v339_v26 = vadd.f32 %v338_v24, %v337_v22  ;;  %v354_v27 = vrot.slane %v353_v25, 2 }
  0xfd   : > { %v340_v28 = vrot.slane %v339_v26, 1  ;;  %v355_v29 = vadd.f32 %v354_v27, %v353_v25 }
  0xff   : > { %v341_v31 = vadd.f32 %v340_v28, %v339_v26  ;;  %v356_v32 = vrot.slane %v355_v29, 1 }
 0x101   : > { %v342_v34 = vadd.f32 %v341_v31, %v332_v30  ;;  %v357_v35 = vadd.f32 %v356_v32, %v355_v29 }
 0x103   : > { %343 = vst [vmem:[#allocation2] sm:$0x1] %v342_v34  ;;  %v358_v36 = vadd.f32 %v357_v35, %v344_v33 }
 0x105   : > { %359 = vst [vmem:[#allocation3] sm:$0x1] %v358_v36 }
 0x106 PF: > { %p360_p6 = scmp.eq.s32.totalorder %s618_s15, 1 }
 0x107   : > { %v372_v45 = vld [vmem:[%s737_s2] sm:$0x1] (%p360_p6) }
 0x108   : > { %364 = sbr.rel (!%p360_p6) target bundleno = 295 (0x127), region = 48  ;;  %v377_v48 = vld [vmem:[%s738_s3] sm:$0x1] (%p360_p6) }
 0x10a   : > { %v365_v37 = vld [vmem:[#allocation2] sm:$0x1] (%p360_p6) }
 0x10b   : > { %v366_v39 = vmul.f32 (%p360_p6), 0.03125, %v365_v37 }
 0x10c   : > { %v367_v38 = vld [vmem:[#allocation3] sm:$0x1] (%p360_p6) }
 0x10d   : > { %v368_v40 = vmul.f32 (%p360_p6), 0.03125, %v367_v38  ;;  %v369_v41 = vmul.f32 (%p360_p6), %v366_v39, %v366_v39 }
 0x10f   : > { %v370_v42 = vsub.f32 %v368_v40, %v369_v41 }
 0x111   : > { %v371_v43 = vmax.f32 %v370_v42, 0.0 }
 0x113   : > { %v373_v44 = vadd.f32 1e-05, %v371_v43 }
 0x115   : > { %602 = vrsqrt.f32 %v373_v44 }
 0x11f   : > { %v603_v46 = vpop.eup %602 }
 0x120   : > { %v375_v47 = vmul.f32 %v603_v46, %v372_v45 }
 0x122   : > { %376 = vst [vmem:[#allocation4] sm:$0x1] %v375_v47  ;;  %v378_v49 = vmul.f32 %v375_v47, %v366_v39 }
 0x124   : > { %v379_v50 = vsub.f32 %v377_v48, %v378_v49 }
 0x126   : > { %380 = vst [vmem:[#allocation5] sm:$0x1] %v379_v50 }
 0x127 PF: > { %p525_p7 = scmp.ne.s32.totalorder %s618_s15, 1 }
 0x129   : > { %383 = sbr.rel (%p525_p7) target bundleno = 311 (0x137), region = 52  ;;  %v526_v51 = vld [vmem:[#allocation4] ss:$0 sm:$0xff] (!%p525_p7) }
 0x12a   : > { %v391_v53 = vmul.f32 (!%p525_p7), %v526_v51, %v695_v7  ;;  %v392_v54 = vmul.f32 (!%p525_p7), %v526_v51, %v309_v9  ;;  %v393_v55 = vmul.f32 (!%p525_p7), %v693_v6, %v526_v51  ;;  %v394_v56 = vmul.f32 (!%p525_p7), %v697_v8, %v526_v51 }
 0x12d   : > { %v527_v52 = vld [vmem:[#allocation5] ss:$0 sm:$0xff] (!%p525_p7) }
 0x12e   : > { %v402_v57 = vadd.f32 (!%p525_p7), %v527_v52, %v391_v53  ;;  %v403_v58 = vadd.f32 (!%p525_p7), %v527_v52, %v392_v54  ;;  %v404_v59 = vadd.f32 (!%p525_p7), %v527_v52, %v393_v55  ;;  %v405_v60 = vadd.f32 (!%p525_p7), %v527_v52, %v394_v56 }
 0x130   : > { %vm406_vm1 = vcmp.ge.f32.partialorder %v402_v57, 0.0  ;;  %vm407_vm2 = vcmp.ge.f32.partialorder %v403_v58, 0.0  ;;  %v410_v61 = vmul.f32 0.2, %v402_v57  ;;  %v411_v62 = vmul.f32 0.2, %v403_v58 }
 0x131   : > { %vm408_vm3 = vcmp.ge.f32.partialorder %v404_v59, 0.0  ;;  %vm409_vm4 = vcmp.ge.f32.partialorder %v405_v60, 0.0  ;;  %v412_v63 = vmul.f32 0.2, %v404_v59  ;;  %v413_v0 = vmul.f32 0.2, %v405_v60 }
 0x132   : > { %v414_v1 = vsel %vm406_vm1, %v402_v57, %v410_v61  ;;  %v415_v2 = vsel %vm407_vm2, %v403_v58, %v411_v62 }
 0x133   : > { %v545_v3 = vpack.c.bf16 %v415_v2, %v414_v1  ;;  %v416_v4 = vsel %vm408_vm3, %v404_v59, %v412_v63  ;;  %v417_v5 = vsel %vm409_vm4, %v405_v60, %v413_v0 }
 0x134   : > { %v550_v6 = vpack.c.bf16 %v417_v5, %v416_v4 }
 0x135   : > { %546 = vst [vmem:[%s739_s4] sm:$0xff] %v545_v3  }
 0x136   : > { %552 = vst [vmem:[%s739_s4 + $0x8] sm:$0xff] %v550_v6  }
 0x137 PF: > { %s14_s17 = sadd.s32 1, %s626_s17   ;;  %s740_s15 = smov %s622_s16 }
 0x138   : > { %p11_p8 = scmp.ge.s32.totalorder %s14_s17, 4   ;;  %s741_s16 = smov %s743_s18 }
 0x13a   :  { %13 = sbr.rel (!%p11_p8) target bundleno = 2 (0x2), region = 82 }

// kernel: discriminator_forward.5
= control target key start
LH: loop header
LB: loop body
LE: loop exit
PB: predicated region body
PF: predicated region fallthrough
CT: control target
= control target key end

     0   :  { %s601_s15 = smov 0   ;;  %s603_s16 = smov 0   ;;  %s670_s0 = inlined_call_operand.vmem [shape: bf16[8,128], index: 0, kind: input, shape index: {}]   ;;  %s671_s1 = inlined_call_operand.vmem [shape: bf16[128,128], index: 1, kind: input, shape index: {}]   ;;  %s672_s2 = inlined_call_operand.vmem [shape: f32[1,128], index: 2, kind: input, shape index: {}]   ;;  %s673_s3 = inlined_call_operand.vmem [shape: f32[1,128], index: 3, kind: input, shape index: {}]   ;;  %s674_s4 = inlined_call_operand.vmem [shape: f32[8,128], index: 4, kind: output, shape index: {}]  }
   0x1   :  { %s605_s17 = smov 0  }
   0x2 LB: > { %s26_s18 = sadd.s32 1, %s567_s16  ;;  %p462_p0 = scmp.ge.s32.totalorder %s571_s17, 1  ;;  %s571_s17 = sphi %s605_s17, %s14_s17   ;;  %s567_s16 = sphi %s603_s16, %s676_s16   ;;  %s563_s15 = sphi %s601_s15, %s675_s15  }
   0x3   : > { %p28_p1 = scmp.ge.s32.totalorder %s26_s18, 2  ;;  %p175_p2 = scmp.lt.s32.totalorder %s571_s17, 3 }
   0x5   : > { %s678_s18 = smov (%p28_p1, %s26_s18), 0  ;;  %p176_p3 = pnand %p462_p0, %p175_p2 }
   0x6   : > { %v539_v0 = vld [vmem:[%s671_s1] sm:$0xff] (!%p176_p3)   ;;  %v573_v1 = vmov (!%p176_p3), 0.0   ;;  %v540_v2 = vld [vmem:[%s671_s1 + $0x8] sm:$0xff] (!%p176_p3)   ;;  %vm574_vm0 = vmmov (!%p176_p3), 0   ;;  %v541_v3 = vld [vmem:[%s671_s1 + $0x10] sm:$0xff] (!%p176_p3)   ;;  %p316_p4 = scmp.eq.s32.totalorder (!%p176_p3), %s563_s15, 0 }
   0x7   : > { %179 = sbr.rel (%p176_p3) target bundleno = 318 (0x13e), region = 36  ;;  %492 = vmatprep.subr.bf16.mxu0 (!%p176_p3), %v573_v1  ;;  %508 = vmatprep.mubr.msk.bf16.mxu0 (!%p176_p3), %vm574_vm0, %v573_v1  ;;  %v542_v4 = vld [vmem:[%s671_s1 + $0x18] sm:$0xff] (!%p176_p3)   ;;  %v543_v5 = vld [vmem:[%s671_s1 + $0x20] sm:$0xff] (!%p176_p3)   ;;  %v544_v6 = vld [vmem:[%s671_s1 + $0x28] sm:$0xff] (!%p176_p3)  }
   0x8   : > { %493 = vmatpush3.bf16.msra.mxu0 (!%p176_p3), %v539_v0  ;;  %v545_v7 = vld [vmem:[%s671_s1 + $0x30] sm:$0xff] (!%p176_p3)   ;;  %v546_v8 = vld [vmem:[%s671_s1 + $0x38] sm:$0xff] (!%p176_p3)   ;;  %v211_v9 = vld [vmem:[%s670_s0] sm:$0xf] (!%p176_p3) }
   0x9   : > { %494 = vmatprep.subr.bf16.mxu0 (!%p176_p3), %v573_v1 }
   0xc   : > { %495 = vmatpush3.bf16.msra.mxu0 (!%p176_p3), %v540_v2 }
   0xd   : > { %496 = vmatprep.subr.bf16.mxu0 (!%p176_p3), %v573_v1 }
   0xe   : > { %v575_v14 = vmov (%p316_p4), 0.0  }
   0xf   : > { %322 = vst [vmem:[#allocation2] sm:$0x1] (%p316_p4), %v575_v14  ;;  %323 = vst [vmem:[#allocation3] sm:$0x1] (%p316_p4), %v575_v14 }
  0x10   : > { %497 = vmatpush3.bf16.msra.mxu0 %v541_v3 }
  0x11   : > { %498 = vmatprep.subr.bf16.mxu0 %v573_v1 }
  0x14   : > { %499 = vmatpush3.bf16.msra.mxu0 %v542_v4 }
  0x15   : > { %500 = vmatprep.subr.bf16.mxu0 %v573_v1 }
  0x18   : > { %501 = vmatpush3.bf16.msra.mxu0 %v543_v5 }
  0x19   : > { %502 = vmatprep.subr.bf16.mxu0 %v573_v1 }
  0x1c   : > { %503 = vmatpush3.bf16.msra.mxu0 %v544_v6 }
  0x1d   : > { %504 = vmatprep.subr.bf16.mxu0 %v573_v1 }
  0x20   : > { %505 = vmatpush3.bf16.msra.mxu0 %v545_v7 }
  0x21   : > { %506 = vmatprep.subr.bf16.mxu0 %v573_v1 }
  0x24   : > { %507 = vmatpush3.bf16.msra.mxu0 %v546_v8 }
  0x27   : > { %509 = vmatmul.mubr.bf16.vlgmr.msra.gmra.mrb[0].mxu0 %v211_v9 }
  0xf7   : > { %321 = sbr.rel (!%p316_p4) target bundleno = 254 (0xfe), region = 40 }
  0xfa   : > { %v310_v10 = vpop.f32.mrb[0].mxu0 }
  0xfb   : > { %v510_v11 = vpop.f32.mrb[1].mxu0 }
  0xfc   : > { %v313_v12 = vpop.f32.mrb[2].mxu0 }
  0xfd   : > { %v511_v13 = vpop.f32.mrb[3].mxu0 }
  0xfe PF: > { %p472_p5 = scmp.ne.s32.totalorder %s563_s15, 0 }
  0xff   : > { %v328_v15 = vrot.slane (!%p472_p5), %v310_v10, 4  ;;  %v337_v16 = vmul.f32 (!%p472_p5), %v310_v10, %v310_v10  ;;  %v327_v25 = vld [vmem:[#allocation2] sm:$0x1] (!%p472_p5)  ;;  %v336_v28 = vld [vmem:[#allocation3] sm:$0x1] (!%p472_p5) }
 0x100   : > { %326 = sbr.rel (%p472_p5) target bundleno = 272 (0x110), region = 44 }
 0x101   : > { %v329_v17 = vadd.f32 (!%p472_p5), %v328_v15, %v310_v10  ;;  %v338_v18 = vrot.slane (!%p472_p5), %v337_v16, 4 }
 0x103   : > { %v330_v19 = vrot.slane (!%p472_p5), %v329_v17, 2  ;;  %v339_v20 = vadd.f32 (!%p472_p5), %v338_v18, %v337_v16 }
 0x105   : > { %v331_v21 = vadd.f32 (!%p472_p5), %v330_v19, %v329_v17  ;;  %v340_v22 = vrot.slane (!%p472_p5), %v339_v20, 2 }
 0x107   : > { %v332_v23 = vrot.slane %v331_v21, 1  ;;  %v341_v24 = vadd.f32 %v340_v22, %v339_v20 }
 0x109   : > { %v333_v26 = vadd.f32 %v332_v23, %v331_v21  ;;  %v342_v27 = vrot.slane %v341_v24, 1 }
 0x10b   : > { %v334_v29 = vadd.f32 %v333_v26, %v327_v25  ;;  %v343_v30 = vadd.f32 %v342_v27, %v341_v24 }
 0x10d   : > { %335 = vst [vmem:[#allocation2] sm:$0x1] %v334_v29  ;;  %v344_v31 = vadd.f32 %v343_v30, %v336_v28 }
 0x10f   : > { %345 = vst [vmem:[#allocation3] sm:$0x1] %v344_v31 }
 0x110 PF: > { %p346_p6 = scmp.eq.s32.totalorder %s563_s15, 1 }
 0x111   : > { %v358_v40 = vld [vmem:[%s672_s2] sm:$0x1] (%p346_p6) }
 0x112   : > { %350 = sbr.rel (!%p346_p6) target bundleno = 305 (0x131), region = 48  ;;  %v363_v43 = vld [vmem:[%s673_s3] sm:$0x1] (%p346_p6) }
 0x114   : > { %v351_v32 = vld [vmem:[#allocation2] sm:$0x1] (%p346_p6) }
 0x115   : > { %v352_v34 = vmul.f32 (%p346_p6), 0.125, %v351_v32 }
 0x116   : > { %v353_v33 = vld [vmem:[#allocation3] sm:$0x1] (%p346_p6) }
 0x117   : > { %v354_v35 = vmul.f32 (%p346_p6), 0.125, %v353_v33  ;;  %v355_v36 = vmul.f32 (%p346_p6), %v352_v34, %v352_v34 }
 0x119   : > { %v356_v37 = vsub.f32 %v354_v35, %v355_v36 }
 0x11b   : > { %v357_v38 = vmax.f32 %v356_v37, 0.0 }
 0x11d   : > { %v359_v39 = vadd.f32 1e-05, %v357_v38 }
 0x11f   : > { %547 = vrsqrt.f32 %v359_v39 }
 0x129   : > { %v548_v41 = vpop.eup %547 }
 0x12a   : > { %v361_v42 = vmul.f32 %v548_v41, %v358_v40 }
 0x12c   : > { %362 = vst [vmem:[#allocation4] sm:$0x1] %v361_v42  ;;  %v364_v44 = vmul.f32 %v361_v42, %v352_v34 }
 0x12e   : > { %v365_v45 = vsub.f32 %v363_v43, %v364_v44 }
 0x130   : > { %366 = vst [vmem:[#allocation5] sm:$0x1] %v365_v45 }
 0x131 PF: > { %p474_p7 = scmp.ne.s32.totalorder %s563_s15, 1 }
 0x133   : > { %369 = sbr.rel (%p474_p7) target bundleno = 318 (0x13e), region = 52  ;;  %v475_v46 = vld [vmem:[#allocation4] ss:$0 sm:$0xff] (!%p474_p7) }
 0x134   : > { %v377_v48 = vmul.f32 (!%p474_p7), %v475_v46, %v310_v10 }
 0x137   : > { %v476_v47 = vld [vmem:[#allocation5] ss:$0 sm:$0xff] (!%p474_p7) }
 0x138   : > { %v385_v49 = vadd.f32 (!%p474_p7), %v476_v47, %v377_v48 }
 0x13a   : > { %vm386_vm1 = vcmp.ge.f32.partialorder %v385_v49, 0.0  ;;  %v387_v50 = vmul.f32 0.2, %v385_v49 }
 0x13c   : > { %v388_v51 = vsel %vm386_vm1, %v385_v49, %v387_v50 }
 0x13d   : > { %389 = vst [vmem:[%s674_s4] sm:$0xff] %v388_v51 }
 0x13e PF: > { %s14_s17 = sadd.s32 1, %s571_s17   ;;  %s675_s15 = smov %s567_s16 }
 0x13f   : > { %p11_p8 = scmp.ge.s32.totalorder %s14_s17, 4   ;;  %s676_s16 = smov %s678_s18 }
 0x141   :  { %13 = sbr.rel (!%p11_p8) target bundleno = 2 (0x2), region = 82 }

</bundles_post_ra>
